<compile_context>
chip_gen: v6e
topology: v6e:2x2x1
jax: 0.10.0
libtpu: 0.0.40
codegen_flags: <defaults>
</compile_context>

<pallas_src>
import functools

import jax
import jax.numpy as jnp
import numpy as np
from jax.experimental import pallas as pl
from jax.experimental.pallas import tpu as pltpu


def basic_block_kernel(x_ref, w1_ref, w2_ref, b1_ref, b2_ref, out_ref, *, H, W,
                       roll_f32):
    # x_ref  : (1, Cin, HWp)   bf16   feature map, spatial flattened on the lane axis
    # w1_ref : (Cout, 9*Cin)   bf16   conv1 weights with BN1 scale folded in
    # w2_ref : (Cout, 9*Cout)  bf16   conv2 weights with BN2 scale folded in
    # b1_ref : (Cout, 1)       f32    folded BN1 bias
    # b2_ref : (Cout, 1)       f32    folded BN2 bias
    # out_ref: (1, Cout, HWp)  bf16
    HWp = x_ref.shape[-1]

    # ---- hoisted boundary masks: one lane-only iota, 8 combined (1, HWp) masks ------
    pos = jax.lax.broadcasted_iota(jnp.int32, (1, HWp), 1)
    col = pos % W
    col_ok = {-1: col >= 1, 0: None, 1: col <= W - 2}           # tap reads x+dx
    row_ok = {-1: pos >= W, 0: None, 1: pos < (H - 1) * W}      # tap reads y+dy
    tap_specs = []   # (static lane shift, mask or None), torch (ky, kx) tap ordering
    for dy in (-1, 0, 1):
        for dx in (-1, 0, 1):
            rm, cm = row_ok[dy], col_ok[dx]
            if rm is None:
                m = cm
            elif cm is None:
                m = rm
            else:
                m = jnp.logical_and(rm, cm)
            tap_specs.append(((-(dy * W + dx)) % HWp, m))

    def conv3x3(src, w_flat):
        # 3x3 'SAME' conv as ONE im2col matmul: W'(Cout, 9C) @ patches(9C, HWp).
        taps = []
        for shift, m in tap_specs:
            t = src if shift == 0 else pltpu.roll(src, shift, 1)   # XLU lane rotate
            t = t.astype(jnp.bfloat16)                             # bf16 patches
            if m is not None:
                t = jnp.where(m, t, 0)
            taps.append(t)
        patches = jnp.concatenate(taps, axis=0)                    # (9C, HWp) bf16
        return jnp.dot(w_flat, patches, preferred_element_type=jnp.float32)

    x_bf16 = x_ref[0]                                              # (Cin, HWp) bf16
    x1 = x_bf16.astype(jnp.float32) if roll_f32 else x_bf16

    # conv1 -> BN1 (scale folded into weights; bias add) -> ReLU
    h = jnp.maximum(conv3x3(x1, w1_ref[...]) + b1_ref[...], 0.0)   # (Cout, HWp) f32
    h = h if roll_f32 else h.astype(jnp.bfloat16)

    # conv2 -> BN2 (bias add) -> + residual -> ReLU
    y = conv3x3(h, w2_ref[...]) + b2_ref[...] + x_bf16.astype(jnp.float32)
    out_ref[0] = jnp.maximum(y, 0.0).astype(out_ref.dtype)         # lane-dense store


@functools.partial(jax.jit,
                   static_argnames=("H", "W", "roll_f32", "single_buffer_consts"))
def _basic_block_call(x_flat, w1f, w2f, b1, b2, *, H, W, roll_f32,
                      single_buffer_consts):
    N, Cin, HWp = x_flat.shape
    Cout = w1f.shape[0]
    kernel = functools.partial(basic_block_kernel, H=H, W=W, roll_f32=roll_f32)

    # Weights / biases are constant across the grid -> no need to double-buffer them.
    const_kw = dict(pipeline_mode=pl.Buffered(1)) if single_buffer_consts else {}
    in_specs = [
        pl.BlockSpec((1, Cin, HWp), lambda n: (n, 0, 0)),
        pl.BlockSpec((Cout, 9 * Cin), lambda n: (0, 0), **const_kw),
        pl.BlockSpec((Cout, 9 * Cout), lambda n: (0, 0), **const_kw),
        pl.BlockSpec((Cout, 1), lambda n: (0, 0), **const_kw),
        pl.BlockSpec((Cout, 1), lambda n: (0, 0), **const_kw),
    ]
    return pl.pallas_call(
        kernel,
        out_shape=jax.ShapeDtypeStruct((N, Cout, HWp), jnp.bfloat16),
        grid_spec=pltpu.PrefetchScalarGridSpec(
            num_scalar_prefetch=0,
            grid=(N,),
            in_specs=in_specs,
            out_specs=pl.BlockSpec((1, Cout, HWp), lambda n: (n, 0, 0)),
        ),
        compiler_params=pltpu.CompilerParams(
            dimension_semantics=("parallel",),
            vmem_limit_bytes=48 * 1024 * 1024,   # above all scoped defaults, < v7x phys
        ),
    )(x_flat, w1f, w2f, b1, b2)


def fold_bn(gamma, beta, mean, var, eps=1e-5):
    scale = gamma / jnp.sqrt(var + eps)
    bias = beta - mean * scale
    return scale, bias


def prep_conv_weight(w_oihw, scale):
    """OIHW torch weight -> (Cout, 9*Cin) bf16; column index = (ky*3 + kx)*Cin + ci."""
    Cout, Cin = w_oihw.shape[0], w_oihw.shape[1]
    w = jnp.transpose(w_oihw, (0, 2, 3, 1)).reshape(Cout, 9 * Cin)
    return (w * scale[:, None]).astype(jnp.bfloat16)


def basic_block_forward(x_nchw, w1_oihw, w2_oihw, bn1, bn2, eps=1e-5):
    """BasicBlock forward (stride=1, downsample=None, BatchNorm in eval mode)."""
    N, Cin, H, W = x_nchw.shape
    Cout = w1_oihw.shape[0]
    assert Cin == Cout, "downsample=None requires inplanes == planes (stride=1)"

    s1, b1 = fold_bn(*bn1, eps=eps)
    s2, b2 = fold_bn(*bn2, eps=eps)
    w1f = prep_conv_weight(w1_oihw, s1)
    w2f = prep_conv_weight(w2_oihw, s2)
    b1c = b1[:, None].astype(jnp.float32)
    b2c = b2[:, None].astype(jnp.float32)

    HW = H * W
    HWp = ((HW + 127) // 128) * 128            # lane-dense padding; masks zero the pad
    x_flat = x_nchw.reshape(N, Cin, HW).astype(jnp.bfloat16)   # pure reshape + cast
    if HWp != HW:
        x_flat = jnp.pad(x_flat, ((0, 0), (0, 0), (0, HWp - HW)))

    # Preferred: bf16 rolls + single-buffered constants.  Fallback: same algorithm with
    # f32 rolls / default buffering (identical numerics) for older Mosaic versions.
    out = err = None
    for roll_f32, single_buf in ((False, True), (True, False)):
        try:
            out = _basic_block_call(x_flat, w1f, w2f, b1c, b2c, H=H, W=W,
                                    roll_f32=roll_f32,
                                    single_buffer_consts=single_buf)
            out = jax.block_until_ready(out)
            break
        except Exception as e:     # compile-time feature probing only
            out, err = None, e
    if out is None:
        raise err

    return out[..., :HW].astype(jnp.float32).reshape(N, Cout, H, W)


def reference_nchw(x, w1, w2, s1, b1, s2, b2, quantize_bf16):
    """Plain-JAX reference matching the PyTorch module (NCHW).

    With quantize_bf16=True the operands are rounded to bf16 exactly like the kernel
    (f32 accumulation), so the comparison can be tight.
    """
    def q(a):
        return a.astype(jnp.bfloat16).astype(jnp.float32) if quantize_bf16 else a

    dn = jax.lax.conv_dimension_numbers(x.shape, w1.shape, ("NCHW", "OIHW", "NCHW"))
    xq = q(x)
    w1q = q(w1 * s1[:, None, None, None])
    w2q = q(w2 * s2[:, None, None, None])
    out = jax.lax.conv_general_dilated(xq, w1q, (1, 1), "SAME", dimension_numbers=dn)
    out = jnp.maximum(out + b1[None, :, None, None], 0.0)
    out = q(out)
    out = jax.lax.conv_general_dilated(out, w2q, (1, 1), "SAME", dimension_numbers=dn)
    out = out + b2[None, :, None, None] + xq
    return jnp.maximum(out, 0.0)


if __name__ == "__main__":
    key = jax.random.PRNGKey(0)
    N, C, H, W = 2, 8, 16, 16          # inplanes == planes, stride=1, downsample=None
    planes = C

    ks = jax.random.split(key, 10)
    x = jax.random.normal(ks[0], (N, C, H, W), jnp.float32)

    # conv weights, torch layout OIHW (out, in, kh, kw), no bias
    w1 = 0.1 * jax.random.normal(ks[1], (planes, C, 3, 3), jnp.float32)
    w2 = 0.1 * jax.random.normal(ks[2], (planes, planes, 3, 3), jnp.float32)

    # BatchNorm (eval mode) parameters, deterministic
    g1 = 1.0 + 0.1 * jax.random.normal(ks[3], (planes,), jnp.float32)
    bt1 = 0.1 * jax.random.normal(ks[4], (planes,), jnp.float32)
    m1 = 0.05 * jax.random.normal(ks[5], (planes,), jnp.float32)
    v1 = 1.0 + 0.1 * jnp.abs(jax.random.normal(ks[6], (planes,), jnp.float32))
    g2 = 1.0 + 0.1 * jax.random.normal(ks[7], (planes,), jnp.float32)
    bt2 = 0.1 * jax.random.normal(ks[8], (planes,), jnp.float32)
    m2 = jnp.zeros((planes,), jnp.float32)
    v2 = jnp.ones((planes,), jnp.float32)

    out = basic_block_forward(x, w1, w2, (g1, bt1, m1, v1), (g2, bt2, m2, v2))
    jax.block_until_ready(out)

    s1, b1 = fold_bn(g1, bt1, m1, v1)
    s2, b2 = fold_bn(g2, bt2, m2, v2)

    # Tight check: reference with the same bf16-rounded operands / f32 accumulation
    # (output is bf16, so allow one bf16 ulp of relative slack).
    ref_bf16 = reference_nchw(x, w1, w2, s1, b1, s2, b2, quantize_bf16=True)
    if not np.allclose(np.asarray(out), np.asarray(ref_bf16), atol=1e-2, rtol=1e-2):
        raise AssertionError("Pallas BasicBlock does not match bf16-matched reference")

    # Sanity check against exact f32 module semantics (bf16 rounding is the only
    # source of deviation, hence the loose tolerance).
    ref_f32 = reference_nchw(x, w1, w2, s1, b1, s2, b2, quantize_bf16=False)
    if not np.allclose(np.asarray(out), np.asarray(ref_f32), atol=1.5e-1, rtol=1.5e-1):
        raise AssertionError("Pallas BasicBlock deviates too far from f32 reference")

    # Exercise the H*W % 128 != 0 path (wrapper zero pad + in-kernel edge masks).
    x2 = jax.random.normal(ks[9], (1, C, 10, 10), jnp.float32)
    out2 = basic_block_forward(x2, w1, w2, (g1, bt1, m1, v1), (g2, bt2, m2, v2))
    ref2 = reference_nchw(x2, w1, w2, s1, b1, s2, b2, quantize_bf16=True)
    if not np.allclose(np.asarray(out2), np.asarray(ref2), atol=1e-2, rtol=1e-2):
        raise AssertionError("Padded-HW path does not match reference")

    print("KERNEL_OK")
</pallas_src>

<mosaic_0001>
module attributes {stable_mosaic.version = 11 : i64} {
  func.func @basic_block_kernel(%arg0: i32, %arg1: memref<1x8x256xbf16, #tpu.memory_space<vmem>>, %arg2: memref<8x72xbf16, #tpu.memory_space<vmem>>, %arg3: memref<8x72xbf16, #tpu.memory_space<vmem>>, %arg4: memref<8x1xf32, #tpu.memory_space<vmem>>, %arg5: memref<8x1xf32, #tpu.memory_space<vmem>>, %arg6: memref<1x8x256xbf16, #tpu.memory_space<vmem>>) attributes {dimension_semantics = [#tpu.dimension_semantics<parallel>], iteration_bounds = array<i64: 2>, scalar_prefetch = 0 : i64, scratch_operands = 0 : i64, tpu.core_type = #tpu.core_type<tc>, window_params = [{transform_indices = @transform_0, window_bounds = array<i64: 1, 8, 256>}, {pipeline_mode = #tpu.pipeline_mode<synchronous>, transform_indices = @transform_1, window_bounds = array<i64: 8, 72>}, {pipeline_mode = #tpu.pipeline_mode<synchronous>, transform_indices = @transform_2, window_bounds = array<i64: 8, 72>}, {pipeline_mode = #tpu.pipeline_mode<synchronous>, transform_indices = @transform_3, window_bounds = array<i64: 8, 1>}, {pipeline_mode = #tpu.pipeline_mode<synchronous>, transform_indices = @transform_4, window_bounds = array<i64: 8, 1>}, {transform_indices = @transform_5, window_bounds = array<i64: 1, 8, 256>}]} {
    %0 = tpu.iota {dimensions = array<i32: 1>} : vector<1x256xi32>
    %c16_i32 = arith.constant 16 : i32
    %c0_i32 = arith.constant 0 : i32
    %1 = arith.cmpi eq, %c16_i32, %c0_i32 : i32
    %c1_i32 = arith.constant 1 : i32
    %2 = arith.select %1, %c1_i32, %c16_i32 : i32
    %3 = vector.broadcast %2 : i32 to vector<1x256xi32>
    %4 = arith.remsi %0, %3 : vector<1x256xi32>
    %c0_i32_0 = arith.constant 0 : i32
    %5 = vector.broadcast %c0_i32_0 : i32 to vector<1x256xi32>
    %6 = arith.cmpi ne, %4, %5 : vector<1x256xi32>
    %c0_i32_1 = arith.constant 0 : i32
    %7 = vector.broadcast %c0_i32_1 : i32 to vector<1x256xi32>
    %8 = arith.cmpi slt, %4, %7 : vector<1x256xi32>
    %c0_i32_2 = arith.constant 0 : i32
    %9 = arith.cmpi slt, %2, %c0_i32_2 : i32
    %10 = vector.broadcast %9 : i1 to vector<1x256xi1>
    %11 = vector.broadcast %10 : vector<1x256xi1> to vector<1x256xi1>
    %12 = arith.xori %8, %11 : vector<1x256xi1>
    %13 = arith.andi %12, %6 : vector<1x256xi1>
    %14 = vector.broadcast %2 : i32 to vector<1x256xi32>
    %15 = arith.addi %4, %14 : vector<1x256xi32>
    %16 = arith.select %13, %15, %4 : vector<1x256xi1>, vector<1x256xi32>
    %c1_i32_3 = arith.constant 1 : i32
    %17 = vector.broadcast %c1_i32_3 : i32 to vector<1x256xi32>
    %18 = arith.cmpi sge, %16, %17 : vector<1x256xi32>
    %c14_i32 = arith.constant 14 : i32
    %19 = vector.broadcast %c14_i32 : i32 to vector<1x256xi32>
    %20 = arith.cmpi sle, %16, %19 : vector<1x256xi32>
    %c16_i32_4 = arith.constant 16 : i32
    %21 = vector.broadcast %c16_i32_4 : i32 to vector<1x256xi32>
    %22 = arith.cmpi sge, %0, %21 : vector<1x256xi32>
    %c240_i32 = arith.constant 240 : i32
    %23 = vector.broadcast %c240_i32 : i32 to vector<1x256xi32>
    %24 = arith.cmpi slt, %0, %23 : vector<1x256xi32>
    %25 = arith.andi %22, %18 : vector<1x256xi1>
    %26 = arith.andi %22, %20 : vector<1x256xi1>
    %27 = arith.andi %24, %18 : vector<1x256xi1>
    %28 = arith.andi %24, %20 : vector<1x256xi1>
    %c0 = arith.constant 0 : index
    %c0_5 = arith.constant 0 : index
    %c0_6 = arith.constant 0 : index
    %29 = vector.load %arg1[%c0, %c0_5, %c0_6] : memref<1x8x256xbf16, #tpu.memory_space<vmem>>, vector<1x8x256xbf16>
    %30 = vector.shape_cast %29 : vector<1x8x256xbf16> to vector<8x256xbf16>
    %c0_7 = arith.constant 0 : index
    %c0_8 = arith.constant 0 : index
    %31 = vector.load %arg2[%c0_7, %c0_8] : memref<8x72xbf16, #tpu.memory_space<vmem>>, vector<8x72xbf16>
    %c17_i32 = arith.constant 17 : i32
    %32 = tpu.dynamic_rotate %30 by %c17_i32 dim 1 : vector<8x256xbf16>, i32 -> vector<8x256xbf16>
    %c0_i32_9 = arith.constant 0 : i32
    %33 = arith.sitofp %c0_i32_9 : i32 to bf16
    %34 = vector.shape_cast %25 : vector<1x256xi1> to vector<1x256xi1>
    %35 = vector.broadcast %34 : vector<1x256xi1> to vector<8x256xi1>
    %36 = vector.broadcast %33 : bf16 to vector<8x256xbf16>
    %37 = arith.select %35, %32, %36 : vector<8x256xi1>, vector<8x256xbf16>
    %c16_i32_10 = arith.constant 16 : i32
    %38 = tpu.dynamic_rotate %30 by %c16_i32_10 dim 1 : vector<8x256xbf16>, i32 -> vector<8x256xbf16>
    %c0_i32_11 = arith.constant 0 : i32
    %39 = arith.sitofp %c0_i32_11 : i32 to bf16
    %40 = vector.shape_cast %22 : vector<1x256xi1> to vector<1x256xi1>
    %41 = vector.broadcast %40 : vector<1x256xi1> to vector<8x256xi1>
    %42 = vector.broadcast %39 : bf16 to vector<8x256xbf16>
    %43 = arith.select %41, %38, %42 : vector<8x256xi1>, vector<8x256xbf16>
    %c15_i32 = arith.constant 15 : i32
    %44 = tpu.dynamic_rotate %30 by %c15_i32 dim 1 : vector<8x256xbf16>, i32 -> vector<8x256xbf16>
    %c0_i32_12 = arith.constant 0 : i32
    %45 = arith.sitofp %c0_i32_12 : i32 to bf16
    %46 = vector.shape_cast %26 : vector<1x256xi1> to vector<1x256xi1>
    %47 = vector.broadcast %46 : vector<1x256xi1> to vector<8x256xi1>
    %48 = vector.broadcast %45 : bf16 to vector<8x256xbf16>
    %49 = arith.select %47, %44, %48 : vector<8x256xi1>, vector<8x256xbf16>
    %c1_i32_13 = arith.constant 1 : i32
    %50 = tpu.dynamic_rotate %30 by %c1_i32_13 dim 1 : vector<8x256xbf16>, i32 -> vector<8x256xbf16>
    %c0_i32_14 = arith.constant 0 : i32
    %51 = arith.sitofp %c0_i32_14 : i32 to bf16
    %52 = vector.shape_cast %18 : vector<1x256xi1> to vector<1x256xi1>
    %53 = vector.broadcast %52 : vector<1x256xi1> to vector<8x256xi1>
    %54 = vector.broadcast %51 : bf16 to vector<8x256xbf16>
    %55 = arith.select %53, %50, %54 : vector<8x256xi1>, vector<8x256xbf16>
    %c255_i32 = arith.constant 255 : i32
    %56 = tpu.dynamic_rotate %30 by %c255_i32 dim 1 : vector<8x256xbf16>, i32 -> vector<8x256xbf16>
    %c0_i32_15 = arith.constant 0 : i32
    %57 = arith.sitofp %c0_i32_15 : i32 to bf16
    %58 = vector.shape_cast %20 : vector<1x256xi1> to vector<1x256xi1>
    %59 = vector.broadcast %58 : vector<1x256xi1> to vector<8x256xi1>
    %60 = vector.broadcast %57 : bf16 to vector<8x256xbf16>
    %61 = arith.select %59, %56, %60 : vector<8x256xi1>, vector<8x256xbf16>
    %c241_i32 = arith.constant 241 : i32
    %62 = tpu.dynamic_rotate %30 by %c241_i32 dim 1 : vector<8x256xbf16>, i32 -> vector<8x256xbf16>
    %c0_i32_16 = arith.constant 0 : i32
    %63 = arith.sitofp %c0_i32_16 : i32 to bf16
    %64 = vector.shape_cast %27 : vector<1x256xi1> to vector<1x256xi1>
    %65 = vector.broadcast %64 : vector<1x256xi1> to vector<8x256xi1>
    %66 = vector.broadcast %63 : bf16 to vector<8x256xbf16>
    %67 = arith.select %65, %62, %66 : vector<8x256xi1>, vector<8x256xbf16>
    %c240_i32_17 = arith.constant 240 : i32
    %68 = tpu.dynamic_rotate %30 by %c240_i32_17 dim 1 : vector<8x256xbf16>, i32 -> vector<8x256xbf16>
    %c0_i32_18 = arith.constant 0 : i32
    %69 = arith.sitofp %c0_i32_18 : i32 to bf16
    %70 = vector.shape_cast %24 : vector<1x256xi1> to vector<1x256xi1>
    %71 = vector.broadcast %70 : vector<1x256xi1> to vector<8x256xi1>
    %72 = vector.broadcast %69 : bf16 to vector<8x256xbf16>
    %73 = arith.select %71, %68, %72 : vector<8x256xi1>, vector<8x256xbf16>
    %c239_i32 = arith.constant 239 : i32
    %74 = tpu.dynamic_rotate %30 by %c239_i32 dim 1 : vector<8x256xbf16>, i32 -> vector<8x256xbf16>
    %c0_i32_19 = arith.constant 0 : i32
    %75 = arith.sitofp %c0_i32_19 : i32 to bf16
    %76 = vector.shape_cast %28 : vector<1x256xi1> to vector<1x256xi1>
    %77 = vector.broadcast %76 : vector<1x256xi1> to vector<8x256xi1>
    %78 = vector.broadcast %75 : bf16 to vector<8x256xbf16>
    %79 = arith.select %77, %74, %78 : vector<8x256xi1>, vector<8x256xbf16>
    %80 = tpu.concatenate %37, %43, %49, %55, %30, %61, %67, %73, %79 in 0 : vector<8x256xbf16>, vector<8x256xbf16>, vector<8x256xbf16>, vector<8x256xbf16>, vector<8x256xbf16>, vector<8x256xbf16>, vector<8x256xbf16>, vector<8x256xbf16>, vector<8x256xbf16> -> vector<72x256xbf16>
    %cst = arith.constant dense<0.000000e+00> : vector<8x256xf32>
    %81 = tpu.matmul %31, %80, %cst {dimension_numbers = #tpu.dot_dimension_numbers<[1], [0], [0], [1], [0, 0, 1, 1], [], []>} : vector<8x72xbf16>, vector<72x256xbf16>, vector<8x256xf32> -> vector<8x256xf32>
    %c0_20 = arith.constant 0 : index
    %c0_21 = arith.constant 0 : index
    %82 = vector.load %arg4[%c0_20, %c0_21] : memref<8x1xf32, #tpu.memory_space<vmem>>, vector<8x1xf32>
    %83 = vector.broadcast %82 : vector<8x1xf32> to vector<8x256xf32>
    %84 = arith.addf %81, %83 : vector<8x256xf32>
    %cst_22 = arith.constant 0.000000e+00 : f32
    %85 = vector.broadcast %cst_22 : f32 to vector<8x256xf32>
    %86 = arith.maximumf %84, %85 : vector<8x256xf32>
    %87 = arith.truncf %86 : vector<8x256xf32> to vector<8x256xbf16>
    %c0_23 = arith.constant 0 : index
    %c0_24 = arith.constant 0 : index
    %88 = vector.load %arg3[%c0_23, %c0_24] : memref<8x72xbf16, #tpu.memory_space<vmem>>, vector<8x72xbf16>
    %c17_i32_25 = arith.constant 17 : i32
    %89 = tpu.dynamic_rotate %87 by %c17_i32_25 dim 1 : vector<8x256xbf16>, i32 -> vector<8x256xbf16>
    %c0_i32_26 = arith.constant 0 : i32
    %90 = arith.sitofp %c0_i32_26 : i32 to bf16
    %91 = vector.shape_cast %25 : vector<1x256xi1> to vector<1x256xi1>
    %92 = vector.broadcast %91 : vector<1x256xi1> to vector<8x256xi1>
    %93 = vector.broadcast %90 : bf16 to vector<8x256xbf16>
    %94 = arith.select %92, %89, %93 : vector<8x256xi1>, vector<8x256xbf16>
    %c16_i32_27 = arith.constant 16 : i32
    %95 = tpu.dynamic_rotate %87 by %c16_i32_27 dim 1 : vector<8x256xbf16>, i32 -> vector<8x256xbf16>
    %c0_i32_28 = arith.constant 0 : i32
    %96 = arith.sitofp %c0_i32_28 : i32 to bf16
    %97 = vector.shape_cast %22 : vector<1x256xi1> to vector<1x256xi1>
    %98 = vector.broadcast %97 : vector<1x256xi1> to vector<8x256xi1>
    %99 = vector.broadcast %96 : bf16 to vector<8x256xbf16>
    %100 = arith.select %98, %95, %99 : vector<8x256xi1>, vector<8x256xbf16>
    %c15_i32_29 = arith.constant 15 : i32
    %101 = tpu.dynamic_rotate %87 by %c15_i32_29 dim 1 : vector<8x256xbf16>, i32 -> vector<8x256xbf16>
    %c0_i32_30 = arith.constant 0 : i32
    %102 = arith.sitofp %c0_i32_30 : i32 to bf16
    %103 = vector.shape_cast %26 : vector<1x256xi1> to vector<1x256xi1>
    %104 = vector.broadcast %103 : vector<1x256xi1> to vector<8x256xi1>
    %105 = vector.broadcast %102 : bf16 to vector<8x256xbf16>
    %106 = arith.select %104, %101, %105 : vector<8x256xi1>, vector<8x256xbf16>
    %c1_i32_31 = arith.constant 1 : i32
    %107 = tpu.dynamic_rotate %87 by %c1_i32_31 dim 1 : vector<8x256xbf16>, i32 -> vector<8x256xbf16>
    %c0_i32_32 = arith.constant 0 : i32
    %108 = arith.sitofp %c0_i32_32 : i32 to bf16
    %109 = vector.shape_cast %18 : vector<1x256xi1> to vector<1x256xi1>
    %110 = vector.broadcast %109 : vector<1x256xi1> to vector<8x256xi1>
    %111 = vector.broadcast %108 : bf16 to vector<8x256xbf16>
    %112 = arith.select %110, %107, %111 : vector<8x256xi1>, vector<8x256xbf16>
    %c255_i32_33 = arith.constant 255 : i32
    %113 = tpu.dynamic_rotate %87 by %c255_i32_33 dim 1 : vector<8x256xbf16>, i32 -> vector<8x256xbf16>
    %c0_i32_34 = arith.constant 0 : i32
    %114 = arith.sitofp %c0_i32_34 : i32 to bf16
    %115 = vector.shape_cast %20 : vector<1x256xi1> to vector<1x256xi1>
    %116 = vector.broadcast %115 : vector<1x256xi1> to vector<8x256xi1>
    %117 = vector.broadcast %114 : bf16 to vector<8x256xbf16>
    %118 = arith.select %116, %113, %117 : vector<8x256xi1>, vector<8x256xbf16>
    %c241_i32_35 = arith.constant 241 : i32
    %119 = tpu.dynamic_rotate %87 by %c241_i32_35 dim 1 : vector<8x256xbf16>, i32 -> vector<8x256xbf16>
    %c0_i32_36 = arith.constant 0 : i32
    %120 = arith.sitofp %c0_i32_36 : i32 to bf16
    %121 = vector.shape_cast %27 : vector<1x256xi1> to vector<1x256xi1>
    %122 = vector.broadcast %121 : vector<1x256xi1> to vector<8x256xi1>
    %123 = vector.broadcast %120 : bf16 to vector<8x256xbf16>
    %124 = arith.select %122, %119, %123 : vector<8x256xi1>, vector<8x256xbf16>
    %c240_i32_37 = arith.constant 240 : i32
    %125 = tpu.dynamic_rotate %87 by %c240_i32_37 dim 1 : vector<8x256xbf16>, i32 -> vector<8x256xbf16>
    %c0_i32_38 = arith.constant 0 : i32
    %126 = arith.sitofp %c0_i32_38 : i32 to bf16
    %127 = vector.shape_cast %24 : vector<1x256xi1> to vector<1x256xi1>
    %128 = vector.broadcast %127 : vector<1x256xi1> to vector<8x256xi1>
    %129 = vector.broadcast %126 : bf16 to vector<8x256xbf16>
    %130 = arith.select %128, %125, %129 : vector<8x256xi1>, vector<8x256xbf16>
    %c239_i32_39 = arith.constant 239 : i32
    %131 = tpu.dynamic_rotate %87 by %c239_i32_39 dim 1 : vector<8x256xbf16>, i32 -> vector<8x256xbf16>
    %c0_i32_40 = arith.constant 0 : i32
    %132 = arith.sitofp %c0_i32_40 : i32 to bf16
    %133 = vector.shape_cast %28 : vector<1x256xi1> to vector<1x256xi1>
    %134 = vector.broadcast %133 : vector<1x256xi1> to vector<8x256xi1>
    %135 = vector.broadcast %132 : bf16 to vector<8x256xbf16>
    %136 = arith.select %134, %131, %135 : vector<8x256xi1>, vector<8x256xbf16>
    %137 = tpu.concatenate %94, %100, %106, %112, %87, %118, %124, %130, %136 in 0 : vector<8x256xbf16>, vector<8x256xbf16>, vector<8x256xbf16>, vector<8x256xbf16>, vector<8x256xbf16>, vector<8x256xbf16>, vector<8x256xbf16>, vector<8x256xbf16>, vector<8x256xbf16> -> vector<72x256xbf16>
    %cst_41 = arith.constant dense<0.000000e+00> : vector<8x256xf32>
    %138 = tpu.matmul %88, %137, %cst_41 {dimension_numbers = #tpu.dot_dimension_numbers<[1], [0], [0], [1], [0, 0, 1, 1], [], []>} : vector<8x72xbf16>, vector<72x256xbf16>, vector<8x256xf32> -> vector<8x256xf32>
    %c0_42 = arith.constant 0 : index
    %c0_43 = arith.constant 0 : index
    %139 = vector.load %arg5[%c0_42, %c0_43] : memref<8x1xf32, #tpu.memory_space<vmem>>, vector<8x1xf32>
    %140 = vector.broadcast %139 : vector<8x1xf32> to vector<8x256xf32>
    %141 = arith.addf %138, %140 : vector<8x256xf32>
    %142 = arith.extf %30 : vector<8x256xbf16> to vector<8x256xf32>
    %143 = arith.addf %141, %142 : vector<8x256xf32>
    %cst_44 = arith.constant 0.000000e+00 : f32
    %144 = vector.broadcast %cst_44 : f32 to vector<8x256xf32>
    %145 = arith.maximumf %143, %144 : vector<8x256xf32>
    %146 = arith.truncf %145 : vector<8x256xf32> to vector<8x256xbf16>
    %c0_45 = arith.constant 0 : index
    %c0_46 = arith.constant 0 : index
    %c0_47 = arith.constant 0 : index
    %147 = vector.load %arg6[%c0_45, %c0_46, %c0_47] : memref<1x8x256xbf16, #tpu.memory_space<vmem>>, vector<1x8x256xbf16>
    %148 = vector.shape_cast %147 : vector<1x8x256xbf16> to vector<8x256xbf16>
    %149 = vector.shape_cast %146 : vector<8x256xbf16> to vector<1x8x256xbf16>
    tpu.vector_store %arg6[%c0_45, %c0_46, %c0_47], %149 {strides = array<i32>} : memref<1x8x256xbf16, #tpu.memory_space<vmem>>, vector<1x8x256xbf16>,
    return
  }
  func.func @transform_0(%arg0: i32) -> (i32, i32, i32) {
    %c0_i32 = arith.constant 0 : i32
    %c0_i32_0 = arith.constant 0 : i32
    %c0_i32_1 = arith.constant 0 : i32
    return %arg0, %c0_i32, %c0_i32_0 : i32, i32, i32
  }
  func.func @transform_1(%arg0: i32) -> (i32, i32) {
    %c0_i32 = arith.constant 0 : i32
    %c0_i32_0 = arith.constant 0 : i32
    %c0_i32_1 = arith.constant 0 : i32
    return %c0_i32, %c0_i32_0 : i32, i32
  }
  func.func @transform_2(%arg0: i32) -> (i32, i32) {
    %c0_i32 = arith.constant 0 : i32
    %c0_i32_0 = arith.constant 0 : i32
    %c0_i32_1 = arith.constant 0 : i32
    return %c0_i32, %c0_i32_0 : i32, i32
  }
  func.func @transform_3(%arg0: i32) -> (i32, i32) {
    %c0_i32 = arith.constant 0 : i32
    %c0_i32_0 = arith.constant 0 : i32
    %c0_i32_1 = arith.constant 0 : i32
    return %c0_i32, %c0_i32_0 : i32, i32
  }
  func.func @transform_4(%arg0: i32) -> (i32, i32) {
    %c0_i32 = arith.constant 0 : i32
    %c0_i32_0 = arith.constant 0 : i32
    %c0_i32_1 = arith.constant 0 : i32
    return %c0_i32, %c0_i32_0 : i32, i32
  }
  func.func @transform_5(%arg0: i32) -> (i32, i32, i32) {
    %c0_i32 = arith.constant 0 : i32
    %c0_i32_0 = arith.constant 0 : i32
    %c0_i32_1 = arith.constant 0 : i32
    return %arg0, %c0_i32, %c0_i32_0 : i32, i32, i32
  }
}

module attributes {stable_mosaic.version = 11 : i64} {
  func.func @basic_block_kernel(%arg0: i32, %arg1: memref<1x8x256xbf16, #tpu.memory_space<vmem>>, %arg2: memref<8x72xbf16, #tpu.memory_space<vmem>>, %arg3: memref<8x72xbf16, #tpu.memory_space<vmem>>, %arg4: memref<8x1xf32, #tpu.memory_space<vmem>>, %arg5: memref<8x1xf32, #tpu.memory_space<vmem>>, %arg6: memref<1x8x256xbf16, #tpu.memory_space<vmem>>) attributes {dimension_semantics = [#tpu.dimension_semantics<parallel>], iteration_bounds = array<i64: 2>, scalar_prefetch = 0 : i64, scratch_operands = 0 : i64, tpu.core_type = #tpu.core_type<tc>, window_params = [{transform_indices = @transform_0, window_bounds = array<i64: 1, 8, 256>}, {pipeline_mode = #tpu.pipeline_mode<synchronous>, transform_indices = @transform_1, window_bounds = array<i64: 8, 72>}, {pipeline_mode = #tpu.pipeline_mode<synchronous>, transform_indices = @transform_2, window_bounds = array<i64: 8, 72>}, {pipeline_mode = #tpu.pipeline_mode<synchronous>, transform_indices = @transform_3, window_bounds = array<i64: 8, 1>}, {pipeline_mode = #tpu.pipeline_mode<synchronous>, transform_indices = @transform_4, window_bounds = array<i64: 8, 1>}, {transform_indices = @transform_5, window_bounds = array<i64: 1, 8, 256>}]} {
    %0 = tpu.iota {dimensions = array<i32: 1>} : vector<1x256xi32>
    %c16_i32 = arith.constant 16 : i32
    %c0_i32 = arith.constant 0 : i32
    %1 = arith.cmpi eq, %c16_i32, %c0_i32 : i32
    %c1_i32 = arith.constant 1 : i32
    %2 = arith.select %1, %c1_i32, %c16_i32 : i32
    %3 = vector.broadcast %2 : i32 to vector<1x256xi32>
    %4 = arith.remsi %0, %3 : vector<1x256xi32>
    %c0_i32_0 = arith.constant 0 : i32
    %5 = vector.broadcast %c0_i32_0 : i32 to vector<1x256xi32>
    %6 = arith.cmpi ne, %4, %5 : vector<1x256xi32>
    %c0_i32_1 = arith.constant 0 : i32
    %7 = vector.broadcast %c0_i32_1 : i32 to vector<1x256xi32>
    %8 = arith.cmpi slt, %4, %7 : vector<1x256xi32>
    %c0_i32_2 = arith.constant 0 : i32
    %9 = arith.cmpi slt, %2, %c0_i32_2 : i32
    %10 = vector.broadcast %9 : i1 to vector<1x256xi1>
    %11 = vector.broadcast %10 : vector<1x256xi1> to vector<1x256xi1>
    %12 = arith.xori %8, %11 : vector<1x256xi1>
    %13 = arith.andi %12, %6 : vector<1x256xi1>
    %14 = vector.broadcast %2 : i32 to vector<1x256xi32>
    %15 = arith.addi %4, %14 : vector<1x256xi32>
    %16 = arith.select %13, %15, %4 : vector<1x256xi1>, vector<1x256xi32>
    %c1_i32_3 = arith.constant 1 : i32
    %17 = vector.broadcast %c1_i32_3 : i32 to vector<1x256xi32>
    %18 = arith.cmpi sge, %16, %17 : vector<1x256xi32>
    %c14_i32 = arith.constant 14 : i32
    %19 = vector.broadcast %c14_i32 : i32 to vector<1x256xi32>
    %20 = arith.cmpi sle, %16, %19 : vector<1x256xi32>
    %c16_i32_4 = arith.constant 16 : i32
    %21 = vector.broadcast %c16_i32_4 : i32 to vector<1x256xi32>
    %22 = arith.cmpi sge, %0, %21 : vector<1x256xi32>
    %c240_i32 = arith.constant 240 : i32
    %23 = vector.broadcast %c240_i32 : i32 to vector<1x256xi32>
    %24 = arith.cmpi slt, %0, %23 : vector<1x256xi32>
    %25 = arith.andi %22, %18 : vector<1x256xi1>
    %26 = arith.andi %22, %20 : vector<1x256xi1>
    %27 = arith.andi %24, %18 : vector<1x256xi1>
    %28 = arith.andi %24, %20 : vector<1x256xi1>
    %c0 = arith.constant 0 : index
    %c0_5 = arith.constant 0 : index
    %c0_6 = arith.constant 0 : index
    %29 = vector.load %arg1[%c0, %c0_5, %c0_6] : memref<1x8x256xbf16, #tpu.memory_space<vmem>>, vector<1x8x256xbf16>
    %30 = vector.shape_cast %29 : vector<1x8x256xbf16> to vector<8x256xbf16>
    %31 = arith.extf %30 : vector<8x256xbf16> to vector<8x256xf32>
    %c0_7 = arith.constant 0 : index
    %c0_8 = arith.constant 0 : index
    %32 = vector.load %arg2[%c0_7, %c0_8] : memref<8x72xbf16, #tpu.memory_space<vmem>>, vector<8x72xbf16>
    %c17_i32 = arith.constant 17 : i32
    %33 = tpu.dynamic_rotate %31 by %c17_i32 dim 1 : vector<8x256xf32>, i32 -> vector<8x256xf32>
    %34 = arith.truncf %33 : vector<8x256xf32> to vector<8x256xbf16>
    %c0_i32_9 = arith.constant 0 : i32
    %35 = arith.sitofp %c0_i32_9 : i32 to bf16
    %36 = vector.shape_cast %25 : vector<1x256xi1> to vector<1x256xi1>
    %37 = vector.broadcast %36 : vector<1x256xi1> to vector<8x256xi1>
    %38 = vector.broadcast %35 : bf16 to vector<8x256xbf16>
    %39 = arith.select %37, %34, %38 : vector<8x256xi1>, vector<8x256xbf16>
    %c16_i32_10 = arith.constant 16 : i32
    %40 = tpu.dynamic_rotate %31 by %c16_i32_10 dim 1 : vector<8x256xf32>, i32 -> vector<8x256xf32>
    %41 = arith.truncf %40 : vector<8x256xf32> to vector<8x256xbf16>
    %c0_i32_11 = arith.constant 0 : i32
    %42 = arith.sitofp %c0_i32_11 : i32 to bf16
    %43 = vector.shape_cast %22 : vector<1x256xi1> to vector<1x256xi1>
    %44 = vector.broadcast %43 : vector<1x256xi1> to vector<8x256xi1>
    %45 = vector.broadcast %42 : bf16 to vector<8x256xbf16>
    %46 = arith.select %44, %41, %45 : vector<8x256xi1>, vector<8x256xbf16>
    %c15_i32 = arith.constant 15 : i32
    %47 = tpu.dynamic_rotate %31 by %c15_i32 dim 1 : vector<8x256xf32>, i32 -> vector<8x256xf32>
    %48 = arith.truncf %47 : vector<8x256xf32> to vector<8x256xbf16>
    %c0_i32_12 = arith.constant 0 : i32
    %49 = arith.sitofp %c0_i32_12 : i32 to bf16
    %50 = vector.shape_cast %26 : vector<1x256xi1> to vector<1x256xi1>
    %51 = vector.broadcast %50 : vector<1x256xi1> to vector<8x256xi1>
    %52 = vector.broadcast %49 : bf16 to vector<8x256xbf16>
    %53 = arith.select %51, %48, %52 : vector<8x256xi1>, vector<8x256xbf16>
    %c1_i32_13 = arith.constant 1 : i32
    %54 = tpu.dynamic_rotate %31 by %c1_i32_13 dim 1 : vector<8x256xf32>, i32 -> vector<8x256xf32>
    %55 = arith.truncf %54 : vector<8x256xf32> to vector<8x256xbf16>
    %c0_i32_14 = arith.constant 0 : i32
    %56 = arith.sitofp %c0_i32_14 : i32 to bf16
    %57 = vector.shape_cast %18 : vector<1x256xi1> to vector<1x256xi1>
    %58 = vector.broadcast %57 : vector<1x256xi1> to vector<8x256xi1>
    %59 = vector.broadcast %56 : bf16 to vector<8x256xbf16>
    %60 = arith.select %58, %55, %59 : vector<8x256xi1>, vector<8x256xbf16>
    %61 = arith.truncf %31 : vector<8x256xf32> to vector<8x256xbf16>
    %c255_i32 = arith.constant 255 : i32
    %62 = tpu.dynamic_rotate %31 by %c255_i32 dim 1 : vector<8x256xf32>, i32 -> vector<8x256xf32>
    %63 = arith.truncf %62 : vector<8x256xf32> to vector<8x256xbf16>
    %c0_i32_15 = arith.constant 0 : i32
    %64 = arith.sitofp %c0_i32_15 : i32 to bf16
    %65 = vector.shape_cast %20 : vector<1x256xi1> to vector<1x256xi1>
    %66 = vector.broadcast %65 : vector<1x256xi1> to vector<8x256xi1>
    %67 = vector.broadcast %64 : bf16 to vector<8x256xbf16>
    %68 = arith.select %66, %63, %67 : vector<8x256xi1>, vector<8x256xbf16>
    %c241_i32 = arith.constant 241 : i32
    %69 = tpu.dynamic_rotate %31 by %c241_i32 dim 1 : vector<8x256xf32>, i32 -> vector<8x256xf32>
    %70 = arith.truncf %69 : vector<8x256xf32> to vector<8x256xbf16>
    %c0_i32_16 = arith.constant 0 : i32
    %71 = arith.sitofp %c0_i32_16 : i32 to bf16
    %72 = vector.shape_cast %27 : vector<1x256xi1> to vector<1x256xi1>
    %73 = vector.broadcast %72 : vector<1x256xi1> to vector<8x256xi1>
    %74 = vector.broadcast %71 : bf16 to vector<8x256xbf16>
    %75 = arith.select %73, %70, %74 : vector<8x256xi1>, vector<8x256xbf16>
    %c240_i32_17 = arith.constant 240 : i32
    %76 = tpu.dynamic_rotate %31 by %c240_i32_17 dim 1 : vector<8x256xf32>, i32 -> vector<8x256xf32>
    %77 = arith.truncf %76 : vector<8x256xf32> to vector<8x256xbf16>
    %c0_i32_18 = arith.constant 0 : i32
    %78 = arith.sitofp %c0_i32_18 : i32 to bf16
    %79 = vector.shape_cast %24 : vector<1x256xi1> to vector<1x256xi1>
    %80 = vector.broadcast %79 : vector<1x256xi1> to vector<8x256xi1>
    %81 = vector.broadcast %78 : bf16 to vector<8x256xbf16>
    %82 = arith.select %80, %77, %81 : vector<8x256xi1>, vector<8x256xbf16>
    %c239_i32 = arith.constant 239 : i32
    %83 = tpu.dynamic_rotate %31 by %c239_i32 dim 1 : vector<8x256xf32>, i32 -> vector<8x256xf32>
    %84 = arith.truncf %83 : vector<8x256xf32> to vector<8x256xbf16>
    %c0_i32_19 = arith.constant 0 : i32
    %85 = arith.sitofp %c0_i32_19 : i32 to bf16
    %86 = vector.shape_cast %28 : vector<1x256xi1> to vector<1x256xi1>
    %87 = vector.broadcast %86 : vector<1x256xi1> to vector<8x256xi1>
    %88 = vector.broadcast %85 : bf16 to vector<8x256xbf16>
    %89 = arith.select %87, %84, %88 : vector<8x256xi1>, vector<8x256xbf16>
    %90 = tpu.concatenate %39, %46, %53, %60, %61, %68, %75, %82, %89 in 0 : vector<8x256xbf16>, vector<8x256xbf16>, vector<8x256xbf16>, vector<8x256xbf16>, vector<8x256xbf16>, vector<8x256xbf16>, vector<8x256xbf16>, vector<8x256xbf16>, vector<8x256xbf16> -> vector<72x256xbf16>
    %cst = arith.constant dense<0.000000e+00> : vector<8x256xf32>
    %91 = tpu.matmul %32, %90, %cst {dimension_numbers = #tpu.dot_dimension_numbers<[1], [0], [0], [1], [0, 0, 1, 1], [], []>} : vector<8x72xbf16>, vector<72x256xbf16>, vector<8x256xf32> -> vector<8x256xf32>
    %c0_20 = arith.constant 0 : index
    %c0_21 = arith.constant 0 : index
    %92 = vector.load %arg4[%c0_20, %c0_21] : memref<8x1xf32, #tpu.memory_space<vmem>>, vector<8x1xf32>
    %93 = vector.broadcast %92 : vector<8x1xf32> to vector<8x256xf32>
    %94 = arith.addf %91, %93 : vector<8x256xf32>
    %cst_22 = arith.constant 0.000000e+00 : f32
    %95 = vector.broadcast %cst_22 : f32 to vector<8x256xf32>
    %96 = arith.maximumf %94, %95 : vector<8x256xf32>
    %c0_23 = arith.constant 0 : index
    %c0_24 = arith.constant 0 : index
    %97 = vector.load %arg3[%c0_23, %c0_24] : memref<8x72xbf16, #tpu.memory_space<vmem>>, vector<8x72xbf16>
    %c17_i32_25 = arith.constant 17 : i32
    %98 = tpu.dynamic_rotate %96 by %c17_i32_25 dim 1 : vector<8x256xf32>, i32 -> vector<8x256xf32>
    %99 = arith.truncf %98 : vector<8x256xf32> to vector<8x256xbf16>
    %c0_i32_26 = arith.constant 0 : i32
    %100 = arith.sitofp %c0_i32_26 : i32 to bf16
    %101 = vector.shape_cast %25 : vector<1x256xi1> to vector<1x256xi1>
    %102 = vector.broadcast %101 : vector<1x256xi1> to vector<8x256xi1>
    %103 = vector.broadcast %100 : bf16 to vector<8x256xbf16>
    %104 = arith.select %102, %99, %103 : vector<8x256xi1>, vector<8x256xbf16>
    %c16_i32_27 = arith.constant 16 : i32
    %105 = tpu.dynamic_rotate %96 by %c16_i32_27 dim 1 : vector<8x256xf32>, i32 -> vector<8x256xf32>
    %106 = arith.truncf %105 : vector<8x256xf32> to vector<8x256xbf16>
    %c0_i32_28 = arith.constant 0 : i32
    %107 = arith.sitofp %c0_i32_28 : i32 to bf16
    %108 = vector.shape_cast %22 : vector<1x256xi1> to vector<1x256xi1>
    %109 = vector.broadcast %108 : vector<1x256xi1> to vector<8x256xi1>
    %110 = vector.broadcast %107 : bf16 to vector<8x256xbf16>
    %111 = arith.select %109, %106, %110 : vector<8x256xi1>, vector<8x256xbf16>
    %c15_i32_29 = arith.constant 15 : i32
    %112 = tpu.dynamic_rotate %96 by %c15_i32_29 dim 1 : vector<8x256xf32>, i32 -> vector<8x256xf32>
    %113 = arith.truncf %112 : vector<8x256xf32> to vector<8x256xbf16>
    %c0_i32_30 = arith.constant 0 : i32
    %114 = arith.sitofp %c0_i32_30 : i32 to bf16
    %115 = vector.shape_cast %26 : vector<1x256xi1> to vector<1x256xi1>
    %116 = vector.broadcast %115 : vector<1x256xi1> to vector<8x256xi1>
    %117 = vector.broadcast %114 : bf16 to vector<8x256xbf16>
    %118 = arith.select %116, %113, %117 : vector<8x256xi1>, vector<8x256xbf16>
    %c1_i32_31 = arith.constant 1 : i32
    %119 = tpu.dynamic_rotate %96 by %c1_i32_31 dim 1 : vector<8x256xf32>, i32 -> vector<8x256xf32>
    %120 = arith.truncf %119 : vector<8x256xf32> to vector<8x256xbf16>
    %c0_i32_32 = arith.constant 0 : i32
    %121 = arith.sitofp %c0_i32_32 : i32 to bf16
    %122 = vector.shape_cast %18 : vector<1x256xi1> to vector<1x256xi1>
    %123 = vector.broadcast %122 : vector<1x256xi1> to vector<8x256xi1>
    %124 = vector.broadcast %121 : bf16 to vector<8x256xbf16>
    %125 = arith.select %123, %120, %124 : vector<8x256xi1>, vector<8x256xbf16>
    %126 = arith.truncf %96 : vector<8x256xf32> to vector<8x256xbf16>
    %c255_i32_33 = arith.constant 255 : i32
    %127 = tpu.dynamic_rotate %96 by %c255_i32_33 dim 1 : vector<8x256xf32>, i32 -> vector<8x256xf32>
    %128 = arith.truncf %127 : vector<8x256xf32> to vector<8x256xbf16>
    %c0_i32_34 = arith.constant 0 : i32
    %129 = arith.sitofp %c0_i32_34 : i32 to bf16
    %130 = vector.shape_cast %20 : vector<1x256xi1> to vector<1x256xi1>
    %131 = vector.broadcast %130 : vector<1x256xi1> to vector<8x256xi1>
    %132 = vector.broadcast %129 : bf16 to vector<8x256xbf16>
    %133 = arith.select %131, %128, %132 : vector<8x256xi1>, vector<8x256xbf16>
    %c241_i32_35 = arith.constant 241 : i32
    %134 = tpu.dynamic_rotate %96 by %c241_i32_35 dim 1 : vector<8x256xf32>, i32 -> vector<8x256xf32>
    %135 = arith.truncf %134 : vector<8x256xf32> to vector<8x256xbf16>
    %c0_i32_36 = arith.constant 0 : i32
    %136 = arith.sitofp %c0_i32_36 : i32 to bf16
    %137 = vector.shape_cast %27 : vector<1x256xi1> to vector<1x256xi1>
    %138 = vector.broadcast %137 : vector<1x256xi1> to vector<8x256xi1>
    %139 = vector.broadcast %136 : bf16 to vector<8x256xbf16>
    %140 = arith.select %138, %135, %139 : vector<8x256xi1>, vector<8x256xbf16>
    %c240_i32_37 = arith.constant 240 : i32
    %141 = tpu.dynamic_rotate %96 by %c240_i32_37 dim 1 : vector<8x256xf32>, i32 -> vector<8x256xf32>
    %142 = arith.truncf %141 : vector<8x256xf32> to vector<8x256xbf16>
    %c0_i32_38 = arith.constant 0 : i32
    %143 = arith.sitofp %c0_i32_38 : i32 to bf16
    %144 = vector.shape_cast %24 : vector<1x256xi1> to vector<1x256xi1>
    %145 = vector.broadcast %144 : vector<1x256xi1> to vector<8x256xi1>
    %146 = vector.broadcast %143 : bf16 to vector<8x256xbf16>
    %147 = arith.select %145, %142, %146 : vector<8x256xi1>, vector<8x256xbf16>
    %c239_i32_39 = arith.constant 239 : i32
    %148 = tpu.dynamic_rotate %96 by %c239_i32_39 dim 1 : vector<8x256xf32>, i32 -> vector<8x256xf32>
    %149 = arith.truncf %148 : vector<8x256xf32> to vector<8x256xbf16>
    %c0_i32_40 = arith.constant 0 : i32
    %150 = arith.sitofp %c0_i32_40 : i32 to bf16
    %151 = vector.shape_cast %28 : vector<1x256xi1> to vector<1x256xi1>
    %152 = vector.broadcast %151 : vector<1x256xi1> to vector<8x256xi1>
    %153 = vector.broadcast %150 : bf16 to vector<8x256xbf16>
    %154 = arith.select %152, %149, %153 : vector<8x256xi1>, vector<8x256xbf16>
    %155 = tpu.concatenate %104, %111, %118, %125, %126, %133, %140, %147, %154 in 0 : vector<8x256xbf16>, vector<8x256xbf16>, vector<8x256xbf16>, vector<8x256xbf16>, vector<8x256xbf16>, vector<8x256xbf16>, vector<8x256xbf16>, vector<8x256xbf16>, vector<8x256xbf16> -> vector<72x256xbf16>
    %cst_41 = arith.constant dense<0.000000e+00> : vector<8x256xf32>
    %156 = tpu.matmul %97, %155, %cst_41 {dimension_numbers = #tpu.dot_dimension_numbers<[1], [0], [0], [1], [0, 0, 1, 1], [], []>} : vector<8x72xbf16>, vector<72x256xbf16>, vector<8x256xf32> -> vector<8x256xf32>
    %c0_42 = arith.constant 0 : index
    %c0_43 = arith.constant 0 : index
    %157 = vector.load %arg5[%c0_42, %c0_43] : memref<8x1xf32, #tpu.memory_space<vmem>>, vector<8x1xf32>
    %158 = vector.broadcast %157 : vector<8x1xf32> to vector<8x256xf32>
    %159 = arith.addf %156, %158 : vector<8x256xf32>
    %160 = arith.extf %30 : vector<8x256xbf16> to vector<8x256xf32>
    %161 = arith.addf %159, %160 : vector<8x256xf32>
    %cst_44 = arith.constant 0.000000e+00 : f32
    %162 = vector.broadcast %cst_44 : f32 to vector<8x256xf32>
    %163 = arith.maximumf %161, %162 : vector<8x256xf32>
    %164 = arith.truncf %163 : vector<8x256xf32> to vector<8x256xbf16>
    %c0_45 = arith.constant 0 : index
    %c0_46 = arith.constant 0 : index
    %c0_47 = arith.constant 0 : index
    %165 = vector.load %arg6[%c0_45, %c0_46, %c0_47] : memref<1x8x256xbf16, #tpu.memory_space<vmem>>, vector<1x8x256xbf16>
    %166 = vector.shape_cast %165 : vector<1x8x256xbf16> to vector<8x256xbf16>
    %167 = vector.shape_cast %164 : vector<8x256xbf16> to vector<1x8x256xbf16>
    tpu.vector_store %arg6[%c0_45, %c0_46, %c0_47], %167 {strides = array<i32>} : memref<1x8x256xbf16, #tpu.memory_space<vmem>>, vector<1x8x256xbf16>,
    return
  }
  func.func @transform_0(%arg0: i32) -> (i32, i32, i32) {
    %c0_i32 = arith.constant 0 : i32
    %c0_i32_0 = arith.constant 0 : i32
    %c0_i32_1 = arith.constant 0 : i32
    return %arg0, %c0_i32, %c0_i32_0 : i32, i32, i32
  }
  func.func @transform_1(%arg0: i32) -> (i32, i32) {
    %c0_i32 = arith.constant 0 : i32
    %c0_i32_0 = arith.constant 0 : i32
    %c0_i32_1 = arith.constant 0 : i32
    return %c0_i32, %c0_i32_0 : i32, i32
  }
  func.func @transform_2(%arg0: i32) -> (i32, i32) {
    %c0_i32 = arith.constant 0 : i32
    %c0_i32_0 = arith.constant 0 : i32
    %c0_i32_1 = arith.constant 0 : i32
    return %c0_i32, %c0_i32_0 : i32, i32
  }
  func.func @transform_3(%arg0: i32) -> (i32, i32) {
    %c0_i32 = arith.constant 0 : i32
    %c0_i32_0 = arith.constant 0 : i32
    %c0_i32_1 = arith.constant 0 : i32
    return %c0_i32, %c0_i32_0 : i32, i32
  }
  func.func @transform_4(%arg0: i32) -> (i32, i32) {
    %c0_i32 = arith.constant 0 : i32
    %c0_i32_0 = arith.constant 0 : i32
    %c0_i32_1 = arith.constant 0 : i32
    return %c0_i32, %c0_i32_0 : i32, i32
  }
  func.func @transform_5(%arg0: i32) -> (i32, i32, i32) {
    %c0_i32 = arith.constant 0 : i32
    %c0_i32_0 = arith.constant 0 : i32
    %c0_i32_1 = arith.constant 0 : i32
    return %arg0, %c0_i32, %c0_i32_0 : i32, i32, i32
  }
}

</mosaic_0001>

<bundles_post_ra>
// kernel: _basic_block_call.1
= control target key start
LH: loop header
LB: loop body
LE: loop exit
PB: predicated region body
PF: predicated region fallthrough
CT: control target
= control target key end

     0   :  { %10 = vsyncpa [#allocation3], 0  ;;  %s1700_s0 = inlined_call_operand.vmem [shape: bf16[2,8,256], index: 0, kind: input, shape index: {}]   ;;  %s1701_s1 = inlined_call_operand.hbm [shape: bf16[8,72], index: 1, kind: input, shape index: {}]   ;;  %s1702_s2 = inlined_call_operand.vmem [shape: bf16[8,72], index: 2, kind: input, shape index: {}]   ;;  %s1703_s3 = inlined_call_operand.vmem [shape: f32[8,1], index: 3, kind: input, shape index: {}]   ;;  %s1704_s4 = inlined_call_operand.vmem [shape: f32[8,1], index: 4, kind: input, shape index: {}]   ;;  %s1705_s5 = inlined_call_operand.hbm [shape: bf16[2,8,256], index: 5, kind: output, shape index: {}]  }
   0x1   :  { %11 = vsyncpa [#allocation4], 0 }
   0x2   :  { %13 = vsyncpa [#allocation4 + $0x1], 0  ;;  %s1202_s18 = smov 0   ;;  %s1204_s19 = smov 0  }
   0x3   :  { %s1206_s20 = smov 0   ;;  %s1208_s21 = smov 0  }
   0x4 LB: > { %s1223_s22 = sadd.s32 4294967295, %s1158_s21   ;;  %s901_s23 = sadd.s32 4294967294, %s1158_s21   ;;  %s1158_s21 = sphi %s1208_s21, %s1813_s21   ;;  %s1154_s20 = sphi %s1206_s20, %s1812_s20   ;;  %s1150_s19 = sphi %s1204_s19, %s1811_s19   ;;  %s1146_s18 = sphi %s1202_s18, %s1810_s18  }
   0x5   : > { %s1227_s24 = sadd.s32 1, %s1158_s21   ;;  %s136_s25 = sadd.s32 1, %s1154_s20 }
   0x6   : > { %s133_s26 = ssub.s32 %s1158_s21, %s1227_s24  ;;  %p146_p0 = scmp.ne.s32.totalorder %s1154_s20, %s1150_s19 }
   0x7   : > { %p134_p1 = scmp.eq.s32.totalorder %s133_s26, 0  ;;  %p147_p2 = scmp.eq.s32.totalorder %s1223_s22, 1 }
   0x8   : > { %p152_p3 = scmp.ne.s32.totalorder %s1150_s19, %s1146_s18  ;;  %p153_p4 = scmp.eq.s32.totalorder %s901_s23, 1 }
   0x9   : > { %s1238_s27 = scalar_select %p134_p1, %s1154_s20, %s136_s25  }
   0xa   : > { %p1240_p5 = por %p147_p2, %p146_p0  ;;  %p1244_p6 = por %p153_p4, %p152_p3 }
   0xb   : > { %p902_p7 = scmp.ge.s32.totalorder %s1158_s21, 1  ;;  %p160_p8 = scmp.lt.s32.totalorder %s1158_s21, 3 }
   0xc   : > { %s1716_s29 = scalar_select %p1244_p6, 1, 0 }
   0xd   : > { %p939_p9 = scmp.eq.s32.totalorder %s1223_s22, 0  ;;  %p1251_p10 = pnand %p902_p7, %p160_p8 }
   0xe   : > { %s1160_s6 = smov [#allocation2]  }
   0xf   : > { %s173_s7 = sshll.u32 %s1160_s6, 4  ;;  %p931_p11 = pneg %p1251_p10  ;;  %s174_s7 = int_to_ptr.vmem [resolvable:$true] %s173_s7 }
  0x10   : > { %s1079_s8 = scalar_lea.vmem %s174_s7, 64  ;;  %p1087_p3 = scmp.lt.s32.totalorder %s174_s7, %s174_s7 }
  0x11   : > { %p932_p12 = pnand %p939_p9, %p931_p11  ;;  %p1080_p0 = scmp.ne.s32.totalorder %s174_s7, %s1079_s8 }
  0x12   : > { %p1088_p4 = scmp.lt.s32.totalorder %s1079_s8, %s1079_s8 }
  0x13   : > { %p1070_p13 = pneg %p932_p12 }
  0x14   : > { %p1089_p6 = por %p1088_p4, %p1087_p3 }
  0x15   : > { %p1082_p1 = pnand %p1080_p0, %p1070_p13 }
  0x17   : > { %p1083_p2 = pneg %p1082_p1 }
  0x19   : > { %p1090_p7 = pnand %p1089_p6, %p1083_p2 }
  0x1b   : > { %1093 = shalt.err (!%p1090_p7)
}
  0x1c   : > { %934 = dma.hbm_to_vmem [thread:$0]  (!%p932_p12), %s1701_s1, 64, %s174_s7, [#allocation3]  }
  0x1d   : > { %203 = sbr.rel (%p1251_p10) target bundleno = 757 (0x2f5), region = 40 }
  0x22   : > { %1137 = dma.done.wait (%p939_p9), [#allocation3], 64  }
  0x23   : > { %1139 = vsyncadd (%p939_p9), [#allocation3], 4294967232  ;;  %p231_p8 = scmp.lt.s32.totalorder %s1223_s22, 1  ;;  %v1161_v0 = vmov 0   ;;  %s1162_s16 = smov 111   ;;  %v556_v5 = vld [vmem:[%s1703_s3] sm:$0xff]  ;;  %v239_v6 = vlaneseq }
  0x24   : > { %604 = vmatprep.mubr.bf16.mxu0 %v1161_v0  ;;  %1025 = vset.pattern.permute.xlu0 %v1161_v0  ;;  %s1163_s17 = smov 113   ;;  %s1164_s23 = smov 112   ;;  %vm1170_vm3 = vmmov 1   ;;  %v1734_v38 = vmov 0  ;;  %v1738_v40 = vmov 0  ;;  %v1740_v41 = vmov 0 }
  0x25   : > { %s232_s11 = scalar_select %p231_p8, %s1223_s22, 1  ;;  %793 = vmatprep.mubr.bf16.mxu1 %v1161_v0  ;;  %v1295_v7 = vand.u32 127, %v239_v6  ;;  %v302_v14 = vshrl.u32 %v239_v6, 7  ;;  %v1742_v42 = vmov 0  ;;  %v1744_v55 = vmov 0 }
  0x26   : > { %s1165_s25 = smov 127   ;;  %s1166_s26 = smov 1  }
  0x27   : > { %s922_s12 = sshll.u32 %s232_s11, 3  ;;  %s1167_s30 = smov 15   ;;  %v241_v8 = vadd.s32 128, %v1295_v7  ;;  %v246_v10 = vand.u32 15, %v1295_v7  ;;  %vm270_vm11 = vcmp.ge.s32.totalorder %v1295_v7, 16  ;;  %v1329_v16 = vsub.s32 4, %v302_v14 }
  0x28   : > { %s235_s15 = scalar_lea.vmem %s1700_s0, %s922_s12  ;;  %s1168_s6 = smov 16   ;;  %v1331_v17 = vsub.s32 0, %v302_v14 }
  0x29   : > { %v1276_v1 = vld [vmem:[%s235_s15] sm:$0xff]  ;;  %s1169_s7 = smov 17   ;;  %v253_v9 = vand.u32 15, %v241_v8  ;;  %vm273_vm1 = vcmp.lt.s32.totalorder %v241_v8, 240  ;;  %vm1308_vm5 = vcmp.le.s32.totalorder %v246_v10, 14  ;;  %vm1314_vm7 = vcmp.ge.s32.totalorder %v246_v10, 1 }
  0x2a   : > { %v283_v2 = vunpack.c.l.bf16 %v1276_v1  ;;  %v284_v3 = vunpack.c.h.bf16 %v1276_v1  ;;  %vm461_vm4 = vmpackc.low %vm273_vm1, %vm1170_vm3  ;;  %v911_v36 = vcombine.high %v1276_v1, %v1276_v1  ;;  %v910_v37 = vcombine.low %v1276_v1, %v1276_v1  ;;  %s228_s14 = sand.u32 1, %s1150_s19   ;;  %s1171_s8 = smov [#allocation5]  }
  0x2b   : > { %vm1299_vm0 = vcmp.le.s32.totalorder %v253_v9, 14  ;;  %vm1303_vm2 = vcmp.ge.s32.totalorder %v253_v9, 1  ;;  %v462_v19 = vsel %vm461_vm4, 65537, %v1161_v0  ;;  %vm1339_vm13 = vmand %vm270_vm11, %vm1308_vm5  ;;  %s907_s15 = sshll.u32 %s228_s14, 3  ;;  %s1098_s9 = sshll.u32 %s1171_s8, 4  ;;  %s1099_s9 = int_to_ptr.vmem [resolvable:$false] %s1098_s9 }
  0x2c   : > { %v985_v4 = vpack.i.bf16 %v284_v3, %v283_v2  ;;  %vm281_vm6 = vmand %vm273_vm1, %vm1299_vm0  ;;  %v470_v26 = vrot.slane %v462_v19, %v1329_v16  ;;  %v466_v29 = vrot.slane %v462_v19, %v1331_v17 }
  0x2d   : > { %vm279_vm8 = vmand %vm273_vm1, %vm1303_vm2 }
  0x2e   : > { %986 = vrot.lane.b32.xlu0 %v985_v4, %s1162_s16  ;;  %996 = vrot.lane.b32.xlu1 %v985_v4, %s1163_s17  ;;  %vm407_vm9 = vmpackc.low %vm1299_vm0, %vm1308_vm5 }
  0x2f   : > { %vm488_vm10 = vmpackc.low %vm281_vm6, %vm1308_vm5  ;;  %v408_v22 = vsel %vm407_vm9, 65537, %v1161_v0  ;;  %vm1708_vm5 = vcmp.lt.s32.totalorder %v1295_v7, 112  ;;  %vm1707_vm6 = vcmp.lt.s32.totalorder %v1295_v7, 111 }
  0x30   : > { %vm434_vm12 = vmpackc.low %vm279_vm8, %vm1314_vm7  ;;  %v489_v18 = vsel %vm488_vm10, 65537, %v1161_v0  ;;  %v416_v30 = vrot.slane %v408_v22, %v1329_v16  ;;  %vm1709_vm8 = vcmask 1043456   ;;  %vm1706_vm10 = vcmp.lt.s32.totalorder %v1295_v7, 113 }
  0x31   : > { %v435_v21 = vsel %vm434_vm12, 65537, %v1161_v0  ;;  %vm1349_vm14 = vmand %vm270_vm11, %vm1314_vm7  ;;  %v497_v24 = vrot.slane %v489_v18, %v1329_v16  ;;  %v493_v25 = vrot.slane %v489_v18, %v1331_v17  ;;  %v412_v31 = vrot.slane %v408_v22, %v1331_v17 }
  0x32   : > { %991 = vrot.lane.b32.xlu0 %v985_v4, %s1164_s23  ;;  %1001 = vrot.lane.b32.xlu1 %v985_v4, %s1165_s25  ;;  %vm380_vm15 = vmpackc.low %vm1303_vm2, %vm1314_vm7  ;;  %v443_v27 = vrot.slane %v435_v21, %v1329_v16  ;;  %v439_v28 = vrot.slane %v435_v21, %v1331_v17  ;;  %vm1405_vm7 = vcmp.ne.s16.totalorder %v470_v26, 0 }
  0x33   : > { %vm353_vm1 = vmpackc.low %vm1299_vm0, %vm1339_vm13  ;;  %v381_v33 = vsel %vm380_vm15, 65537, %v1161_v0  ;;  %vm1389_vm12 = vcmp.ne.s16.totalorder %v497_v24, 0  ;;  %vm1393_vm13 = vcmp.ne.s16.totalorder %v493_v25, 0  ;;  %vm1413_vm15 = vcmp.ne.s16.totalorder %v466_v29, 0 }
  0x34   : > { %vm299_vm4 = vmpackc.low %vm1303_vm2, %vm1349_vm14  ;;  %v1381_v32 = vsel %vm353_vm1, 65537, %v1161_v0  ;;  %v1741_v41 = vsel %vm1413_vm15, 4294967295, %v1740_v41  ;;  %vm1417_vm1 = vcmp.ne.s16.totalorder %v416_v30, 0  ;;  %v389_v48 = vrot.slane %v381_v33, %v1329_v16 }
  0x35   : > { %vm326_vm9 = vmpackc.low %vm1170_vm3, %vm270_vm11  ;;  %vm1401_vm3 = vcmp.ne.s16.totalorder %v443_v27, 0  ;;  %vm1409_vm11 = vcmp.ne.s16.totalorder %v439_v28, 0  ;;  %v1743_v42 = vsel %vm1417_vm1, 4294967295, %v1742_v42  ;;  %v1427_v43 = vsel %vm299_vm4, 65537, %v1161_v0 }
  0x36   : > { %1006 = vrot.lane.b32.xlu0 %v985_v4, %s1166_s26  ;;  %1011 = vrot.lane.b32.xlu1 %v985_v4, %s1167_s30  ;;  %v1735_v38 = vsel %vm1401_vm3, 4294967295, %v1734_v38  ;;  %v1739_v40 = vsel %vm1409_vm11, 4294967295, %v1738_v40  ;;  %v327_v44 = vsel %vm326_vm9, 65537, %v1161_v0  ;;  %v362_v47 = vrot.slane %v1381_v32, %v1329_v16 }
  0x37   : > { %v358_v49 = vrot.slane %v1381_v32, %v1331_v17  ;;  %v385_v50 = vrot.slane %v381_v33, %v1331_v17  ;;  %vm1437_vm2 = vcmp.ne.s16.totalorder %v412_v31, 0  ;;  %v308_v56 = vrot.slane %v1427_v43, %v1329_v16 }
  0x38   : > { %v1745_v55 = vsel %vm1437_vm2, 4294967295, %v1744_v55  ;;  %v335_v57 = vrot.slane %v327_v44, %v1329_v16  ;;  %v304_v58 = vrot.slane %v1427_v43, %v1331_v17  ;;  %v331_v59 = vrot.slane %v327_v44, %v1331_v17 }
  0x39   : > { %vm1457_vm9 = vcmp.ne.s16.totalorder %v389_v48, 0  ;;  %vm1750_vm4 = vcmp.lt.s32.totalorder %v1295_v7, 127  ;;  %vm1483_vm0 = vcmp.ne.s16.totalorder %v362_v47, 0  ;;  %v615_v47 = vld [vmem:[%s1702_s2] sm:$0xf] }
  0x3a   : > { %1016 = vrot.lane.b32.xlu0 %v985_v4, %s1168_s6  ;;  %1021 = vrot.lane.b32.xlu1 %v985_v4, %s1169_s7  ;;  %vm1751_vm14 = vmmov %vm1750_vm4 }
  0x3e   : > { %559 = vperm.xlu0 %1025, %v556_v5  }
  0xa0   : > { %v987_v45 = vpop.permute.xlu0 %986  ;;  %v997_v46 = vpop.permute.xlu1 %996 }
  0xa1   : > { %v989_v51 = vunpack.i.h.bf16 %v987_v45  ;;  %v988_v52 = vunpack.i.l.bf16 %v987_v45  ;;  %v999_v53 = vunpack.i.h.bf16 %v997_v46  ;;  %v998_v54 = vunpack.i.l.bf16 %v997_v46 }
  0xa3   : > { %v481_v60 = vsel %vm1707_vm6, %v989_v51, %v988_v52  ;;  %v480_v61 = vsel %vm1707_vm6, %v988_v52, %v989_v51  ;;  %v427_v62 = vsel %vm1706_vm10, %v999_v53, %v998_v54  ;;  %v426_v63 = vsel %vm1706_vm10, %v998_v54, %v999_v53 }
  0xa4   : > { %v992_v0 = vpop.permute.xlu0 %991  ;;  %v483_v4 = vpack.c.bf16 %v481_v60, %v481_v60  ;;  %v1002_v5 = vpop.permute.xlu1 %1001  ;;  %v482_v6 = vpack.c.bf16 %v480_v61, %v480_v61  ;;  %v429_v8 = vpack.c.bf16 %v427_v62, %v427_v62  ;;  %v428_v9 = vpack.c.bf16 %v426_v63, %v426_v63 }
  0xa5   : > { %v994_v11 = vunpack.i.h.bf16 %v992_v0  ;;  %v993_v12 = vunpack.i.l.bf16 %v992_v0  ;;  %v1004_v13 = vunpack.i.h.bf16 %v1002_v5  ;;  %v1003_v14 = vunpack.i.l.bf16 %v1002_v5 }
  0xa6   : > { %v501_v15 = vsel %vm1389_vm12, %v483_v4, 0  ;;  %v500_v16 = vsel %vm1393_vm13, %v482_v6, 0  ;;  %v447_v17 = vsel %vm1401_vm3, %v429_v8, 0  ;;  %v446_v18 = vsel %vm1409_vm11, %v428_v9, 0 }
  0xa7   : > { %vm1469_vm10 = vcmp.ne.s16.totalorder %v385_v50, 0  ;;  %v453_v20 = vsel %vm1708_vm5, %v993_v12, %v994_v11  ;;  %v454_v21 = vsel %vm1708_vm5, %v994_v11, %v993_v12  ;;  %912 = vmatprep.subr.msk.bf16.mxu0 %vm1709_vm8, %v501_v15  ;;  %v399_v22 = vsel %vm1750_vm4, %v1003_v14, %v1004_v13 }
  0xa8   : > { %v400_v23 = vsel %vm1751_vm14, %v1004_v13, %v1003_v14  ;;  %v455_v25 = vpack.c.bf16 %v453_v20, %v453_v20  ;;  %v456_v26 = vpack.c.bf16 %v454_v21, %v454_v21  ;;  %v401_v27 = vpack.c.bf16 %v399_v22, %v399_v22  ;;  %v1007_v29 = vpop.permute.xlu0 %1006  ;;  %v1012_v30 = vpop.permute.xlu1 %1011 }
  0xa9   : > { %v402_v28 = vpack.c.bf16 %v400_v23, %v400_v23  ;;  %vm1487_vm6 = vcmp.ne.s16.totalorder %v335_v57, 0  ;;  %vm1491_vm5 = vcmp.ne.s16.totalorder %v331_v59, 0  ;;  %v567_v33 = vsel %vm1709_vm8, %v500_v16, 0 }
  0xaa   : > { %v1009_v43 = vunpack.i.h.bf16 %v1007_v29  ;;  %v1008_v44 = vunpack.i.l.bf16 %v1007_v29  ;;  %v1014_v45 = vunpack.i.h.bf16 %v1012_v30  ;;  %vm1496_vm14 = vcmp.ne.s16.totalorder %v358_v49, 0  ;;  %579 = vmatpush1.bf16.msra.mxu0 %v567_v33 }
  0xab   : > { %vm1500_vm4 = vcmp.ne.s16.totalorder %v308_v56, 0  ;;  %v1013_v48 = vunpack.i.l.bf16 %v1012_v30  ;;  %v474_v50 = vsel %vm1405_vm7, %v456_v26, 0  ;;  %v473_v51 = vsel %vm1413_vm15, %v455_v25, 0 }
  0xac   : > { %v420_v52 = vsel %vm1417_vm1, %v402_v28, 0  ;;  %vm1762_vm8 = vcmp.lt.s32.totalorder %v1295_v7, 1  ;;  %v522_v54 = vrot.slane %v474_v50, 4  ;;  %v521_v56 = vrot.slane %v473_v51, 4  ;;  %v1017_v61 = vpop.permute.xlu0 %1016  ;;  %v1022_v62 = vpop.permute.xlu1 %1021 }
  0xad   : > { %v372_v49 = vsel %vm1762_vm8, %v1008_v44, %v1009_v43  ;;  %vm1763_vm11 = vmmov %vm1762_vm8  ;;  %vm1514_vm3 = vcmp.ne.s16.totalorder %v304_v58, 0  ;;  %v518_v63 = vrot.slane %v420_v52, 4  ;;  %v419_v0 = vsel %vm1437_vm2, %v401_v27, 0 }
  0xae   : > { %v373_v53 = vsel %vm1763_vm11, %v1009_v43, %v1008_v44  ;;  %v375_v60 = vpack.c.bf16 %v372_v49, %v372_v49  ;;  %vm1766_vm1 = vcmask 1043456   ;;  %v1019_v6 = vunpack.i.h.bf16 %v1017_v61 }
  0xaf   : > { %v374_v59 = vpack.c.bf16 %v373_v53, %v373_v53  ;;  %v554_v4 = vsel %vm1766_vm1, %v447_v17, %v522_v54  ;;  %vm1767_vm8 = vmmov %vm1766_vm1  ;;  %v1018_v8 = vunpack.i.l.bf16 %v1017_v61  ;;  %v1024_v9 = vunpack.i.h.bf16 %v1022_v62 }
  0xb0   : > { %v550_v5 = vsel %vm1767_vm8, %v446_v18, %v521_v56  ;;  %580 = vmatprep.subr.bf16.mxu0 %v554_v4  ;;  %v1023_v58 = vunpack.i.l.bf16 %v1022_v62  ;;  %vm1768_vm11 = vmmov %vm1766_vm1  ;;  %v517_v12 = vrot.slane %v419_v0, 4  ;;  %vm1769_vm15 = vcmp.lt.s32.totalorder %v1295_v7, 16  ;;  %v285_v56 = vld [vmem:[#allocation2] sm:$0xf] }
  0xb1   : > { %v546_v11 = vsel %vm1768_vm11, %v911_v36, %v518_v63  ;;  %581 = vmatpush1.bf16.msra.mxu0 %v550_v5  ;;  %v318_v13 = vsel %vm1769_vm15, %v1018_v8, %v1019_v6  ;;  %vm1770_vm2 = vmmov %vm1769_vm15  ;;  %vm1771_vm1 = vcmp.lt.s32.totalorder %v1295_v7, 15  ;;  %v393_v16 = vsel %vm1457_vm9, %v375_v60, 0 }
  0xb2   : > { %v319_v14 = vsel %vm1770_vm2, %v1019_v6, %v1018_v8  ;;  %v345_v15 = vsel %vm1771_vm1, %v1013_v48, %v1014_v45  ;;  %v321_v18 = vpack.c.bf16 %v318_v13, %v318_v13  ;;  %582 = vmatprep.subr.bf16.mxu0 %v546_v11  ;;  %v542_v36 = vsel %vm1767_vm8, %v910_v37, %v517_v12  ;;  %vm1772_vm15 = vmmov %vm1771_vm1 }
  0xb3   : > { %v320_v17 = vpack.c.bf16 %v319_v14, %v319_v14  ;;  %v348_v20 = vpack.c.bf16 %v345_v15, %v345_v15  ;;  %v509_v21 = vrot.slane %v393_v16, 4  ;;  %v346_v22 = vsel %vm1772_vm15, %v1014_v45, %v1013_v48  ;;  %vm1774_vm11 = vmmov %vm1767_vm8 }
  0xb4   : > { %v392_v23 = vsel %vm1469_vm10, %v374_v59, 0  ;;  %vm1773_vm2 = vcmp.lt.s32.totalorder %v1295_v7, 17  ;;  %v347_v27 = vpack.c.bf16 %v346_v22, %v346_v22  ;;  %v339_v30 = vsel %vm1487_vm6, %v321_v18, 0  ;;  %vm1776_vm15 = vmmov %vm1767_vm8 }
  0xb5   : > { %v291_v25 = vsel %vm1773_vm2, %v1023_v58, %v1024_v9  ;;  %v366_v26 = vsel %vm1483_vm0, %v348_v20, 0  ;;  %v508_v28 = vrot.slane %v392_v23, 4  ;;  %583 = vmatpush1.bf16.msra.mxu0 %v542_v36  ;;  %vm1775_vm1 = vmmov %vm1773_vm2  ;;  %v338_v43 = vsel %vm1491_vm5, %v320_v17, 0 }
  0xb6   : > { %v294_v29 = vpack.c.bf16 %v291_v25, %v291_v25  ;;  %v538_v37 = vsel %vm1774_vm11, %v366_v26, %v509_v21  ;;  %v292_v33 = vsel %vm1775_vm1, %v1024_v9, %v1023_v58  ;;  %v365_v44 = vsel %vm1496_vm14, %v347_v27, 0  ;;  %vm1777_vm2 = vmmov %vm1767_vm8  ;;  %v746_v9 = vld [vmem:[%s1704_s4] sm:$0xff] }
  0xb7   : > { %584 = vmatprep.subr.bf16.mxu0 %v538_v37  ;;  %v505_v48 = vrot.slane %v339_v30, 4  ;;  %v293_v50 = vpack.c.bf16 %v292_v33, %v292_v33  ;;  %v534_v51 = vsel %vm1767_vm8, %v365_v44, %v508_v28  ;;  %v504_v52 = vrot.slane %v338_v43, 4 }
  0xb8   : > { %v312_v45 = vsel %vm1500_vm4, %v294_v29, 0  ;;  %vm562_vm11 = vcmask 588800   ;;  %vm1778_vm1 = vcmp.lt.s32.totalorder %v1295_v7, 111 }
  0xb9   : > { %v530_v49 = vsel %vm1776_vm15, %v312_v45, %v505_v48  ;;  %v311_v53 = vsel %vm1514_vm3, %v293_v50, 0  ;;  %585 = vmatpush1.bf16.msra.mxu0 %v534_v51  ;;  %v560_v59 = vpop.permute.xlu0 %559  ;;  %vm1779_vm8 = vmmov %vm1778_vm1  ;;  %vm1780_vm15 = vcmp.lt.s32.totalorder %v1295_v7, 113 }
  0xba   : > { %586 = vmatprep.subr.bf16.mxu0 %v530_v49  ;;  %v526_v54 = vsel %vm1777_vm2, %v311_v53, %v504_v52  ;;  %vm1781_vm2 = vmmov %vm1780_vm15 }
  0xbd   : > { %587 = vmatpush1.bf16.msra.mxu0 %v526_v54 }
  0xc0   : > { %913 = vmatmul.mubr.msk.bf16.vlgmr.msra.gmra.mxu0 %vm562_vm11, %v285_v56 }
 0x180   : > { %v606_v60 = vpop.f32.mrf.mxu0 }
 0x181   : > { %v607_v61 = vadd.f32 %v606_v60, %v560_v59 }
 0x182   : > { %v608_v62 = vpop.f32.mrf.mxu0 }
 0x183   : > { %v609_v63 = vadd.f32 %v608_v62, %v560_v59  ;;  %v1563_v4 = vmax.f32 %v607_v61, 0.0 }
 0x184   : > { %v610_v0 = vpop.f32.mrf.mxu0 }
 0x185   : > { %v1565_v5 = vmax.f32 %v609_v63, 0.0 }
 0x186   : > { %v611_v6 = vpop.f32.mrf.mxu0 }
 0x187   : > { %v1036_v8 = vpack.i.bf16 %v1565_v5, %v1563_v4  ;;  %v657_v30 = vpack.c.bf16 %v1565_v5, %v1565_v5 }
 0x189   : > { %1037 = vrot.lane.b32.xlu0 %v1036_v8, %s1163_s17  ;;  %1027 = vrot.lane.b32.xlu1 %v1036_v8, %s1162_s16  ;;  %s924_s16 = sshll.u32 %s1223_s22, 7  ;;  %s230_s17 = scalar_lea.vmem [#allocation5], %s907_s15 }
 0x18a   : > { %s1100_s22 = scalar_lea.vmem %s1099_s9, 256 }
 0x18d   : > { %1047 = vrot.lane.b32.xlu0 %v1036_v8, %s1166_s26  ;;  %1032 = vrot.lane.b32.xlu1 %v1036_v8, %s1164_s23  ;;  %s830_s23 = sshll.u32 %s230_s17, 4  ;;  %s831_s23 = int_to_ptr.vmem [resolvable:$true] %s830_s23 }
 0x18e   : > { %p1101_p11 = scmp.lt.s32.totalorder %s831_s23, %s1099_s9 }
 0x191   : > { %1057 = vrot.lane.b32.xlu0 %v1036_v8, %s1168_s6  ;;  %1042 = vrot.lane.b32.xlu1 %v1036_v8, %s1165_s25  ;;  %s816_s6 = scalar_lea.sflag [#allocation4], %s228_s14 }
 0x195   : > { %749 = vperm.xlu0 %1025, %v746_v9   ;;  %1052 = vrot.lane.b32.xlu1 %v1036_v8, %s1167_s30  ;;  %s828_s30 = scalar_lea.hbm %s1705_s5, %s924_s16 }
 0x199   : > { %1062 = vrot.lane.b32.xlu1 %v1036_v8, %s1169_s7  ;;  %s1094_s7 = scalar_lea.vmem %s831_s23, 128 }
 0x19a   : > { %p1095_p6 = scmp.ne.s32.totalorder %s831_s23, %s1094_s7  ;;  %p1102_p12 = scmp.lt.s32.totalorder %s1100_s22, %s1094_s7 }
 0x19c   : > { %p1096_p9 = pnand %p1095_p6, %p1240_p5  ;;  %p1103_p13 = por %p1102_p12, %p1101_p11 }
 0x19e   : > { %p1097_p10 = pneg %p1096_p9 }
 0x1a0   : > { %p1104_p0 = pnand %p1103_p13, %p1097_p10 }
 0x1fb   : > { %v1038_v58 = vpop.permute.xlu0 %1037  ;;  %v1028_v11 = vpop.permute.xlu1 %1027 }
 0x1fc   : > { %v1040_v12 = vunpack.i.h.bf16 %v1038_v58  ;;  %v1039_v13 = vunpack.i.l.bf16 %v1038_v58  ;;  %v1030_v14 = vunpack.i.h.bf16 %v1028_v11  ;;  %v1029_v15 = vunpack.i.l.bf16 %v1028_v11 }
 0x1fe   : > { %v693_v16 = vsel %vm1778_vm1, %v1030_v14, %v1029_v15  ;;  %v692_v17 = vsel %vm1779_vm8, %v1029_v15, %v1030_v14  ;;  %v673_v18 = vsel %vm1780_vm15, %v1040_v12, %v1039_v13  ;;  %v672_v23 = vsel %vm1781_vm2, %v1039_v13, %v1040_v12 }
 0x1ff   : > { %v1048_v36 = vpop.permute.xlu0 %1047  ;;  %v1033_v20 = vpop.permute.xlu1 %1032  ;;  %v695_v21 = vpack.c.bf16 %v693_v16, %v693_v16  ;;  %v694_v22 = vpack.c.bf16 %v692_v17, %v692_v17  ;;  %v675_v37 = vpack.c.bf16 %v673_v18, %v673_v18  ;;  %vm1782_vm1 = vcmp.lt.s32.totalorder %v1295_v7, 112 }
 0x200   : > { %v1050_v25 = vunpack.i.h.bf16 %v1048_v36  ;;  %v1049_v26 = vunpack.i.l.bf16 %v1048_v36  ;;  %v1035_v27 = vunpack.i.h.bf16 %v1033_v20  ;;  %v1034_v28 = vunpack.i.l.bf16 %v1033_v20  ;;  %vm1783_vm8 = vmmov %vm1782_vm1 }
 0x201   : > { %v697_v29 = vsel %vm1389_vm12, %v695_v21, 0  ;;  %vm1784_vm15 = vcmask 1043456   ;;  %v696_v44 = vsel %vm1393_vm13, %v694_v22, 0  ;;  %v674_v45 = vpack.c.bf16 %v672_v23, %v672_v23 }
 0x202   : > { %v682_v33 = vsel %vm1782_vm1, %v1034_v28, %v1035_v27  ;;  %v683_v43 = vsel %vm1783_vm8, %v1035_v27, %v1034_v28  ;;  %914 = vmatprep.subr.msk.bf16.mxu1 %vm1784_vm15, %v697_v29  ;;  %vm1785_vm2 = vcmp.lt.s32.totalorder %v1295_v7, 1  ;;  %vm1787_vm1 = vmmov %vm1784_vm15  ;;  %vm1788_vm8 = vnez %v1735_v38 }
 0x203   : > { %v650_v34 = vsel %vm1785_vm2, %v1049_v26, %v1050_v25  ;;  %vm1786_vm12 = vmmov %vm1785_vm2  ;;  %v684_v50 = vpack.c.bf16 %v682_v33, %v682_v33  ;;  %v685_v51 = vpack.c.bf16 %v683_v43, %v683_v43  ;;  %v1058_v52 = vpop.permute.xlu0 %1057  ;;  %v1043_v49 = vpop.permute.xlu1 %1042  ;;  %v756_v60 = vsel %vm1787_vm1, %v696_v44, 0 }
 0x204   : > { %v651_v48 = vsel %vm1786_vm12, %v1050_v25, %v1049_v26  ;;  %v1060_v53 = vunpack.i.h.bf16 %v1058_v52  ;;  %v1059_v54 = vunpack.i.l.bf16 %v1058_v52  ;;  %v1045_v56 = vunpack.i.h.bf16 %v1043_v49  ;;  %768 = vmatpush1.bf16.msra.mxu1 %v756_v60 }
 0x205   : > { %v1044_v59 = vunpack.i.l.bf16 %v1043_v49  ;;  %v677_v35 = vsel %vm1788_vm8, %v675_v37, 0  ;;  %v687_v61 = vsel %vm1405_vm7, %v685_v51, 0  ;;  %vm1789_vm13 = vnez %v1741_v41 }
 0x206   : > { %v686_v62 = vsel %vm1789_vm13, %v684_v50, 0  ;;  %vm1790_vm15 = vcmp.lt.s32.totalorder %v1295_v7, 16  ;;  %vm1791_vm2 = vcmp.lt.s32.totalorder %v1295_v7, 127  ;;  %vm1793_vm1 = vnez %v1739_v40 }
 0x207   : > { %v630_v63 = vsel %vm1790_vm15, %v1059_v54, %v1060_v53  ;;  %v662_v0 = vsel %vm1791_vm2, %v1044_v59, %v1045_v56  ;;  %vm1792_vm12 = vmmov %vm1791_vm2  ;;  %v676_v38 = vsel %vm1793_vm1, %v674_v45, 0  ;;  %v652_v6 = vpack.c.bf16 %v651_v48, %v651_v48  ;;  %v1053_v58 = vpop.permute.xlu1 %1052 }
 0x208   : > { %v663_v5 = vsel %vm1792_vm12, %v1045_v56, %v1044_v59  ;;  %v653_v8 = vpack.c.bf16 %v650_v34, %v650_v34  ;;  %v664_v39 = vpack.c.bf16 %v662_v0, %v662_v0  ;;  %v1055_v41 = vunpack.i.h.bf16 %v1053_v58  ;;  %vm1794_vm7 = vmmov %vm1790_vm15 }
 0x209   : > { %v665_v9 = vpack.c.bf16 %v663_v5, %v663_v5  ;;  %v1054_v11 = vunpack.i.l.bf16 %v1053_v58  ;;  %v713_v12 = vrot.slane %v687_v61, 4  ;;  %v712_v13 = vrot.slane %v686_v62, 4 }
 0x20a   : > { %v631_v14 = vsel %vm1794_vm7, %v1060_v53, %v1059_v54  ;;  %v633_v15 = vpack.c.bf16 %v630_v63, %v630_v63  ;;  %vm1795_vm8 = vnez %v1743_v42  ;;  %vm1796_vm13 = vnez %v1745_v55 }
 0x20b   : > { %v667_v16 = vsel %vm1795_vm8, %v665_v9, 0  ;;  %v666_v40 = vsel %vm1796_vm13, %v664_v39, 0  ;;  %vm1797_vm15 = vcmask 1043456   ;;  %v1063_v21 = vpop.permute.xlu1 %1062  ;;  %v656_v22 = vpack.c.bf16 %v1563_v4, %v1563_v4 }
 0x20c   : > { %v744_v17 = vsel %vm1797_vm15, %v677_v35, %v713_v12  ;;  %vm1798_vm2 = vmmov %vm1797_vm15  ;;  %v709_v36 = vrot.slane %v667_v16, 4  ;;  %v708_v20 = vrot.slane %v666_v40, 4  ;;  %vm1799_vm12 = vcmp.lt.s32.totalorder %v1295_v7, 15 }
 0x20d   : > { %v740_v18 = vsel %vm1798_vm2, %v676_v38, %v712_v13  ;;  %769 = vmatprep.subr.bf16.mxu1 %v744_v17  ;;  %v640_v23 = vsel %vm1799_vm12, %v1054_v11, %v1055_v41  ;;  %v655_v42 = vsel %vm1457_vm9, %v653_v8, 0  ;;  %vm1800_vm1 = vmmov %vm1799_vm12  ;;  %v632_v25 = vpack.c.bf16 %v631_v14, %v631_v14 }
 0x20e   : > { %v641_v55 = vsel %vm1800_vm1, %v1055_v41, %v1054_v11  ;;  %770 = vmatpush1.bf16.msra.mxu1 %v740_v18  ;;  %v1065_v26 = vunpack.i.h.bf16 %v1063_v21  ;;  %v1064_v27 = vunpack.i.l.bf16 %v1063_v21  ;;  %vm1801_vm7 = vmmov %vm1798_vm2  ;;  %v643_v37 = vpack.c.bf16 %v640_v23, %v640_v23 }
 0x20f   : > { %v736_v28 = vsel %vm1801_vm7, %v657_v30, %v709_v36  ;;  %vm1802_vm8 = vmmov %vm1798_vm2  ;;  %v642_v4 = vpack.c.bf16 %v641_v55, %v641_v55  ;;  %v635_v33 = vsel %vm1487_vm6, %v633_v15, 0  ;;  %vm1803_vm13 = vcmp.lt.s32.totalorder %v1295_v7, 17 }
 0x210   : > { %771 = vmatprep.subr.bf16.mxu1 %v736_v28  ;;  %v732_v29 = vsel %vm1802_vm8, %v656_v22, %v708_v20  ;;  %v620_v10 = vsel %vm1803_vm13, %v1064_v27, %v1065_v26  ;;  %vm1804_vm9 = vmmov %vm1803_vm13  ;;  %v705_v44 = vrot.slane %v655_v42, 4  ;;  %v654_v45 = vsel %vm1469_vm10, %v652_v6, 0  ;;  %v750_v32 = vpop.permute.xlu0 %749 }
 0x211   : > { %v621_v43 = vsel %vm1804_vm9, %v1065_v26, %v1064_v27  ;;  %v623_v34 = vpack.c.bf16 %v620_v10, %v620_v10  ;;  %v645_v30 = vsel %vm1483_vm0, %v643_v37, 0  ;;  %vm1805_vm15 = vmmov %vm1798_vm2  ;;  %v644_v31 = vsel %vm1496_vm14, %v642_v4, 0 }
 0x212   : > { %v622_v48 = vpack.c.bf16 %v621_v43, %v621_v43  ;;  %772 = vmatpush1.bf16.msra.mxu1 %v732_v29  ;;  %v728_v50 = vsel %vm1805_vm15, %v645_v30, %v705_v44  ;;  %v701_v51 = vrot.slane %v635_v33, 4  ;;  %v704_v7 = vrot.slane %v654_v45, 4  ;;  %vm1806_vm6 = vmmov %vm1798_vm2 }
 0x213   : > { %773 = vmatprep.subr.bf16.mxu1 %v728_v50  ;;  %v625_v52 = vsel %vm1500_vm4, %v623_v34, 0  ;;  %v634_v24 = vsel %vm1491_vm5, %v632_v25, 0  ;;  %vm1807_vm0 = vmmov %vm1798_vm2 }
 0x214   : > { %v720_v19 = vsel %vm1806_vm6, %v625_v52, %v701_v51  ;;  %v724_v49 = vsel %vm1807_vm0, %v644_v31, %v704_v7  ;;  %v624_v53 = vsel %vm1514_vm3, %v622_v48, 0  ;;  %v700_v46 = vrot.slane %v634_v24, 4  ;;  %vm1808_vm10 = vmmov %vm1807_vm0 }
 0x216   : > { %774 = vmatpush1.bf16.msra.mxu1 %v724_v49  ;;  %v716_v54 = vsel %vm1808_vm10, %v624_v53, %v700_v46 }
 0x217   : > { %775 = vmatprep.subr.bf16.mxu1 %v720_v19 }
 0x21a   : > { %776 = vmatpush1.bf16.msra.mxu1 %v716_v54 }
 0x21d   : > { %915 = vmatmul.mubr.msk.bf16.vlgmr.msra.gmra.mxu1 %vm562_vm11, %v615_v47 }
 0x2dd   : > { %v795_v56 = vpop.f32.mrf.mxu1 }
 0x2de   : > { %v796_v59 = vadd.f32 %v795_v56, %v750_v32 }
 0x2df   : > { %v797_v60 = vpop.f32.mrf.mxu1 }
 0x2e0   : > { %v802_v57 = vadd.f32 %v796_v59, %v283_v2  ;;  %v798_v35 = vadd.f32 %v797_v60, %v750_v32 }
 0x2e1   : > { %v799_v61 = vpop.f32.mrf.mxu1 }
 0x2e2   : > { %v803_v62 = vadd.f32 %v798_v35, %v284_v3  ;;  %v804_v0 = vmax.f32 %v802_v57, 0.0 }
 0x2e3   : > { %v800_v63 = vpop.f32.mrf.mxu1 }
 0x2e4   : > { %v805_v5 = vmax.f32 %v803_v62, 0.0 }
 0x2e6   : > { %v923_v38 = vpack.c.bf16 %v805_v5, %v804_v0 }
 0x2e8   : > { %814 = vst [vmem:[%s230_s17] sm:$0xff] %v923_v38 }
 0x2e9   : > { %1107 = shalt.err (!%p1104_p0)
}
 0x2ea   : > { %s1108_s10 = scalar_lea.hbm %s828_s30, 128  ;;  %s1112_s13 = scalar_lea.hbm %s1705_s5, 256 }
 0x2eb   : > { %p1109_p1 = scmp.ne.s32.totalorder %s828_s30, %s1108_s10  ;;  %p1113_p4 = scmp.lt.s32.totalorder %s828_s30, %s1705_s5 }
 0x2ec   : > { %p1114_p7 = scmp.lt.s32.totalorder %s1112_s13, %s1108_s10 }
 0x2ed   : > { %p1110_p2 = pnand %p1109_p1, %p1240_p5 }
 0x2ee   : > { %p1115_p8 = por %p1114_p7, %p1113_p4 }
 0x2ef   : > { %p1111_p3 = pneg %p1110_p2 }
 0x2f1   : > { %p1116_p6 = pnand %p1115_p8, %p1111_p3 }
 0x2f3   : > { %1119 = shalt.err (!%p1116_p6)
}
 0x2f4   : > { %929 = dma.vmem_to_hbm [thread:$0]  (%p1240_p5), %s831_s23, 128, %s828_s30, %s816_s6  }
 0x2f5 PF: > { %p941_p9 = scmp.ge.s32.totalorder %s1158_s21, 2  ;;  %s842_s16 = sand.u32 1, %s1146_s18  }
 0x2f6   : > { %p1809_p10 = scmp.ne.s32.totalorder %s1716_s29, 0  ;;  %s843_s17 = scalar_lea.sflag [#allocation4], %s842_s16 }
 0x2f8   : > { %p936_p11 = pnand %p941_p9, %p1809_p10 }
 0x2fa   : > { %p937_p12 = pneg %p936_p11 }
 0x2fc   : > { %1141 = dma.done.wait (%p937_p12), %s843_s17, 128  }
 0x2fd   : > { %1143 = vsyncadd (%p937_p12), %s843_s17, 4294967168  ;;  %p16_p13 = scmp.ge.s32.totalorder %s1227_s24, 4   ;;  %s1810_s18 = smov %s1150_s19 }
 0x2fe   : > { %s1811_s19 = smov %s1154_s20  ;;  %s1812_s20 = smov %s1238_s27 }
 0x2ff   : > { %s1813_s21 = smov %s1227_s24  ;;  %18 = sbr.rel (!%p16_p13) target bundleno = 4 (0x4), region = 80 }
 0x304   :  { %848 = vsyncpa [#allocation3], 1 }
 0x305   :  { %850 = vsyncpa [#allocation3 + $0x1], 1 }
 0x306   :  { %851 = vsyncpa [#allocation4], 1 }
 0x307   :  { %853 = vsyncpa [#allocation4 + $0x1], 1 }

</bundles_post_ra>
